<compile_context>
chip_gen: v6e
topology: v6e:2x2x1
jax: 0.10.0
libtpu: 0.0.40
codegen_flags: <defaults>
</compile_context>

<pallas_src>
import jax
import jax.numpy as jnp
from jax.experimental import pallas as pl
from jax.experimental.pallas import tpu as pltpu


def rnn_discriminator_kernel(x_ref, len_ref, wih_t_ref, whh_t_ref, bias_ref,
                             lw_ref, lb_ref, out_ref, seq_ref, gates_ref):
    """Multi-layer LSTM (packed-sequence semantics) + Linear + sigmoid.

    x_ref     : (T, TB, E)   mxu dtype  embeddings, time-major, one batch tile
    len_ref   : (TB, 1)      i32        sequence lengths
    wih_t_ref : (L, E, 4H)   mxu dtype  input->gates weights, pre-transposed
    whh_t_ref : (L, H, 4H)   mxu dtype  hidden->gates weights, pre-transposed
    bias_ref  : (L, 1, 4H)   f32        b_ih + b_hh, pre-summed
    lw_ref    : (1, H)       f32        final linear weight
    lb_ref    : (1, 1)       f32        final linear bias
    out_ref   : (TB, 1)      f32        sigmoid(logit)
    seq_ref   : (T*TB, H)    mxu dtype  scratch: current layer's per-step outputs
    gates_ref : (T*TB, 4H)   f32        scratch: fused input projection
    """
    T, TB, E = x_ref.shape
    L = wih_t_ref.shape[0]
    H = whh_t_ref.shape[1]
    mxu_dtype = wih_t_ref.dtype
    lengths = len_ref[...]                                 # (TB, 1) int32

    h = jnp.zeros((TB, H), jnp.float32)
    for layer in range(L):                                 # static layer loop
        wih_t = wih_t_ref[layer]                           # (E, 4H)
        whh_t = whh_t_ref[layer]                           # (H, 4H)

        # --- Fused input projection: ONE (T*TB, E) x (E, 4H) MXU push per
        # layer (was T tiny-M pushes). Off the serial critical path. ---------
        if layer == 0:
            # TB is a sublane multiple of the packed tile, so this reshape is
            # layout-preserving (no relayout copy inside the recurrence).
            x_flat = x_ref[...].reshape(T * TB, E)         # (T*TB, E)
        else:
            x_flat = seq_ref[...]                          # (T*TB, H)
        gates_ref[...] = (jnp.dot(x_flat, wih_t,
                                  preferred_element_type=jnp.float32)
                          + bias_ref[layer])               # broadcast (1,4H), once/layer

        # --- Serial recurrence: only h @ W_hh^T remains on the chain. -------
        h = jnp.zeros((TB, H), jnp.float32)
        c = jnp.zeros((TB, H), jnp.float32)
        for t in range(T):                                 # fully unrolled (T=8)
            g_in = gates_ref[pl.ds(t * TB, TB)]            # tile-aligned slice
            gates = g_in + jnp.dot(h.astype(mxu_dtype), whh_t,
                                   preferred_element_type=jnp.float32)  # (TB,4H)
            # Full-tile activations (4H == 128 lanes), then slice per gate.
            sig = jax.nn.sigmoid(gates)
            tnh = jnp.tanh(gates)
            i_g = sig[:, 0 * H:1 * H]                      # gate order: i, f, g, o
            f_g = sig[:, 1 * H:2 * H]
            g_g = tnh[:, 2 * H:3 * H]
            o_g = sig[:, 3 * H:4 * H]
            c_new = f_g * c + i_g * g_g
            h_new = o_g * jnp.tanh(c_new)
            # pack_padded_sequence semantics: state advances only while t < len[b].
            valid = lengths > t                            # (TB, 1) bool
            h = jnp.where(valid, h_new, h)
            c = jnp.where(valid, c_new, c)
            if layer < L - 1:                              # last layer's per-step
                seq_ref[pl.ds(t * TB, TB)] = h.astype(mxu_dtype)   # outputs unused

    # Dropout on hidden[-1] is identity at eval time.
    # Final Linear on the VPU: N=1 MXU matmul would waste a full push/pop.
    logits = jnp.sum(h * lw_ref[...], axis=-1, keepdims=True) + lb_ref[...]  # (TB,1)
    out_ref[...] = jax.nn.sigmoid(logits)


def rnn_discriminator_forward(tokens, lengths, params, *,
                              mxu_dtype=jnp.bfloat16, tb_max=256):
    """tokens: (B, T) int32, lengths: (B,) int32 (sorted descending).

    mxu_dtype: dtype of MXU operands (bf16 on v6e/v7x/v5e; f32 for exactness).
    tb_max   : max batch-tile rows per grid step / per core.
    """
    emb_table = params["embedding"]                        # (ntokens, E)
    B, T = tokens.shape
    E = emb_table.shape[1]
    L, _, H = params["whh"].shape                          # (L, 4H, H)

    # Sublane padding: 8 rows for f32, 16 for bf16 MXU operands (packed tile),
    # so every (TB, .) operand is a full vreg and all slices stay tile-aligned.
    sub = 16 if jnp.dtype(mxu_dtype) == jnp.dtype(jnp.bfloat16) else 8
    tb_cap = max(sub, (tb_max // sub) * sub)
    B_pad = ((B + sub - 1) // sub) * sub
    TB = min(B_pad, tb_cap)
    B_pad = ((B_pad + TB - 1) // TB) * TB                  # divisible by TB
    n_tiles = B_pad // TB

    tokens_p = jnp.zeros((B_pad, T), jnp.int32).at[:B].set(tokens.astype(jnp.int32))
    len_p = jnp.zeros((B_pad, 1), jnp.int32).at[:B, 0].set(lengths.astype(jnp.int32))

    # Embedding gather, emitted directly time-major and already in the MXU dtype
    # (halves the HBM slab vs. f32).
    # TODO(synk): fuse this gather into the kernel (scalar-prefetch tokens +
    # manual DMA row-gather from the table kept in HBM) to remove the HBM
    # round-trip of the (T, B, E) slab at production batch sizes.
    x_tbe = jnp.take(emb_table, tokens_p.T, axis=0).astype(mxu_dtype)   # (T,B_pad,E)

    # One-time host-side weight repacking (in a real model do this at load):
    # lane-dense (.., 4H) weight operands, biases folded, linear row-vector.
    wih_t = jnp.transpose(params["wih"], (0, 2, 1)).astype(mxu_dtype)   # (L, E, 4H)
    whh_t = jnp.transpose(params["whh"], (0, 2, 1)).astype(mxu_dtype)   # (L, H, 4H)
    bias = (params["bih"] + params["bhh"]).astype(jnp.float32)          # (L, 1, 4H)
    lin_w = params["lin_w"].astype(jnp.float32)                         # (1, H)
    lin_b = params["lin_b"].astype(jnp.float32)                         # (1, 1)

    grid_spec = pltpu.PrefetchScalarGridSpec(
        num_scalar_prefetch=0,
        grid=(n_tiles,),
        in_specs=[
            pl.BlockSpec((T, TB, E), lambda b: (0, b, 0)),        # x: batch-tiled
            pl.BlockSpec((TB, 1), lambda b: (b, 0)),              # lengths
            pl.BlockSpec((L, E, 4 * H), lambda b: (0, 0, 0)),     # weights resident
            pl.BlockSpec((L, H, 4 * H), lambda b: (0, 0, 0)),
            pl.BlockSpec((L, 1, 4 * H), lambda b: (0, 0, 0)),
            pl.BlockSpec((1, H), lambda b: (0, 0)),
            pl.BlockSpec((1, 1), lambda b: (0, 0)),
        ],
        out_specs=pl.BlockSpec((TB, 1), lambda b: (b, 0)),
        scratch_shapes=[
            pltpu.VMEM((T * TB, H), mxu_dtype),                   # seq_ref
            pltpu.VMEM((T * TB, 4 * H), jnp.float32),             # gates_ref
        ],
    )
    # v7x: the "parallel" batch axis splits over the 2 TensorCores; on v5e/v6e
    # it buys pipelined x-tile prefetch. At production TB, re-check VMEM budget
    # against the scoped defaults (16 MiB v5e, 32 MiB v6e/v7x) and raise
    # vmem_limit_bytes in CompilerParams if needed.
    out = pl.pallas_call(
        rnn_discriminator_kernel,
        out_shape=jax.ShapeDtypeStruct((B_pad, 1), jnp.float32),
        grid_spec=grid_spec,
        compiler_params=pltpu.CompilerParams(
            dimension_semantics=("parallel",)),
    )(x_tbe, len_p, wih_t, whh_t, bias, lin_w, lin_b)
    return out[:B, 0]                                      # drop padding, squeeze(1)


def reference_forward(tokens, lengths, params):
    """Pure-JAX f32 reference of the same semantics, for correctness checks."""
    emb = jnp.take(params["embedding"], tokens, axis=0)    # (B, T, E)
    B, T, E = emb.shape
    L, fourH, H = params["whh"].shape
    x = emb
    h_last = None
    for layer in range(L):
        wih = params["wih"][layer]
        whh = params["whh"][layer]
        b = params["bih"][layer][0] + params["bhh"][layer][0]
        h = jnp.zeros((B, H), jnp.float32)
        c = jnp.zeros((B, H), jnp.float32)
        outs = []
        for t in range(T):
            x_t = x[:, t, :]
            gates = x_t @ wih.T + h @ whh.T + b
            i_g = jax.nn.sigmoid(gates[:, 0 * H:1 * H])
            f_g = jax.nn.sigmoid(gates[:, 1 * H:2 * H])
            g_g = jnp.tanh(gates[:, 2 * H:3 * H])
            o_g = jax.nn.sigmoid(gates[:, 3 * H:4 * H])
            c_new = f_g * c + i_g * g_g
            h_new = o_g * jnp.tanh(c_new)
            valid = (lengths > t).reshape(B, 1)
            h = jnp.where(valid, h_new, h)
            c = jnp.where(valid, c_new, c)
            outs.append(h)
        x = jnp.stack(outs, axis=1)
        h_last = h
    logits = h_last @ params["lin_w"].T + params["lin_b"]
    return jax.nn.sigmoid(logits)[:, 0]


def make_params(key, ntokens, emsize, nhidden, nlayers):
    assert emsize == nhidden, "stacked-weight layout requires emsize == nhidden"
    initrange = 0.05
    k = jax.random.split(key, 6)
    stdv = 1.0 / jnp.sqrt(nhidden)
    return {
        "embedding": jax.random.uniform(k[0], (ntokens, emsize), jnp.float32,
                                        -initrange, initrange),
        "wih": jax.random.uniform(k[1], (nlayers, 4 * nhidden, emsize),
                                  jnp.float32, -stdv, stdv),
        "whh": jax.random.uniform(k[2], (nlayers, 4 * nhidden, nhidden),
                                  jnp.float32, -stdv, stdv),
        "bih": jax.random.uniform(k[3], (nlayers, 1, 4 * nhidden),
                                  jnp.float32, -stdv, stdv),
        "bhh": jax.random.uniform(k[4], (nlayers, 1, 4 * nhidden),
                                  jnp.float32, -stdv, stdv),
        "lin_w": jax.random.uniform(k[5], (1, nhidden), jnp.float32,
                                    -initrange, initrange),
        "lin_b": jnp.zeros((1, 1), jnp.float32),
    }


if __name__ == "__main__":
    # Small shapes consistent with the module: batch=4, seq=8, emsize=nhidden=32.
    B, T, E, H, NTOK, NLAYERS = 4, 8, 32, 32, 50, 2
    key = jax.random.PRNGKey(0)
    kp, kt = jax.random.split(key)

    params = make_params(kp, NTOK, E, H, NLAYERS)
    tokens = jax.random.randint(kt, (B, T), 0, NTOK, dtype=jnp.int32)
    # pack_padded_sequence expects lengths sorted in decreasing order.
    lengths = jnp.array([8, 6, 5, 3], dtype=jnp.int32)

    ref = reference_forward(tokens, lengths, params)

    # f32 MXU operands: exact-semantics check against the pure-JAX reference.
    out_f32 = jax.block_until_ready(
        rnn_discriminator_forward(tokens, lengths, params, mxu_dtype=jnp.float32))
    assert out_f32.shape == (B,)
    assert jnp.allclose(out_f32, ref, atol=1e-5, rtol=1e-5), (out_f32, ref)

    # bf16 MXU operands (production path on v5e/v6e/v7x): f32 gate math & accum.
    out_bf16 = jax.block_until_ready(
        rnn_discriminator_forward(tokens, lengths, params, mxu_dtype=jnp.bfloat16))
    assert out_bf16.shape == (B,)
    assert jnp.allclose(out_bf16, ref, atol=3e-2, rtol=3e-2), (out_bf16, ref)

    print("KERNEL_OK")
</pallas_src>

<mosaic_0001>
module attributes {stable_mosaic.version = 11 : i64} {
  func.func @rnn_discriminator_kernel(%arg0: i32, %arg1: memref<8x8x32xf32, #tpu.memory_space<vmem>>, %arg2: memref<8x1xi32, #tpu.memory_space<vmem>>, %arg3: memref<2x32x128xf32, #tpu.memory_space<vmem>>, %arg4: memref<2x32x128xf32, #tpu.memory_space<vmem>>, %arg5: memref<2x1x128xf32, #tpu.memory_space<vmem>>, %arg6: memref<1x32xf32, #tpu.memory_space<vmem>>, %arg7: memref<1x1xf32, #tpu.memory_space<vmem>>, %arg8: memref<8x1xf32, #tpu.memory_space<vmem>>, %arg9: memref<64x32xf32, #tpu.memory_space<vmem>>, %arg10: memref<64x128xf32, #tpu.memory_space<vmem>>) attributes {dimension_semantics = [#tpu.dimension_semantics<parallel>], iteration_bounds = array<i64: 1>, scalar_prefetch = 0 : i64, scratch_operands = 2 : i64, tpu.core_type = #tpu.core_type<tc>, window_params = [{transform_indices = @transform_0, window_bounds = array<i64: 8, 8, 32>}, {transform_indices = @transform_1, window_bounds = array<i64: 8, 1>}, {pipeline_mode = #tpu.pipeline_mode<synchronous>, transform_indices = @transform_2, window_bounds = array<i64: 2, 32, 128>}, {pipeline_mode = #tpu.pipeline_mode<synchronous>, transform_indices = @transform_3, window_bounds = array<i64: 2, 32, 128>}, {pipeline_mode = #tpu.pipeline_mode<synchronous>, transform_indices = @transform_4, window_bounds = array<i64: 2, 1, 128>}, {pipeline_mode = #tpu.pipeline_mode<synchronous>, transform_indices = @transform_5, window_bounds = array<i64: 1, 32>}, {pipeline_mode = #tpu.pipeline_mode<synchronous>, transform_indices = @transform_6, window_bounds = array<i64: 1, 1>}, {transform_indices = @transform_7, window_bounds = array<i64: 8, 1>}]} {
    %c0 = arith.constant 0 : index
    %c0_0 = arith.constant 0 : index
    %0 = vector.load %arg2[%c0, %c0_0] : memref<8x1xi32, #tpu.memory_space<vmem>>, vector<8x1xi32>
    %c0_1 = arith.constant 0 : index
    %c0_2 = arith.constant 0 : index
    %c0_3 = arith.constant 0 : index
    %1 = vector.load %arg3[%c0_1, %c0_2, %c0_3] : memref<2x32x128xf32, #tpu.memory_space<vmem>>, vector<1x32x128xf32>
    %2 = vector.shape_cast %1 : vector<1x32x128xf32> to vector<32x128xf32>
    %c0_4 = arith.constant 0 : index
    %c0_5 = arith.constant 0 : index
    %c0_6 = arith.constant 0 : index
    %3 = vector.load %arg4[%c0_4, %c0_5, %c0_6] : memref<2x32x128xf32, #tpu.memory_space<vmem>>, vector<1x32x128xf32>
    %4 = vector.shape_cast %3 : vector<1x32x128xf32> to vector<32x128xf32>
    %c0_7 = arith.constant 0 : index
    %c0_8 = arith.constant 0 : index
    %c0_9 = arith.constant 0 : index
    %5 = vector.load %arg1[%c0_7, %c0_8, %c0_9] : memref<8x8x32xf32, #tpu.memory_space<vmem>>, vector<8x8x32xf32>
    %6 = vector.shape_cast %5 : vector<8x8x32xf32> to vector<64x32xf32>
    %cst = arith.constant dense<0.000000e+00> : vector<64x128xf32>
    %7 = tpu.matmul %6, %2, %cst {dimension_numbers = #tpu.dot_dimension_numbers<[1], [0], [0], [1], [0, 0, 1, 1], [], []>} : vector<64x32xf32>, vector<32x128xf32>, vector<64x128xf32> -> vector<64x128xf32>
    %c0_10 = arith.constant 0 : index
    %c0_11 = arith.constant 0 : index
    %c0_12 = arith.constant 0 : index
    %8 = vector.load %arg5[%c0_10, %c0_11, %c0_12] : memref<2x1x128xf32, #tpu.memory_space<vmem>>, vector<1x1x128xf32>
    %9 = vector.shape_cast %8 : vector<1x1x128xf32> to vector<1x128xf32>
    %10 = vector.broadcast %9 : vector<1x128xf32> to vector<64x128xf32>
    %11 = arith.addf %7, %10 : vector<64x128xf32>
    %c0_13 = arith.constant 0 : index
    %c0_14 = arith.constant 0 : index
    %12 = vector.load %arg10[%c0_13, %c0_14] : memref<64x128xf32, #tpu.memory_space<vmem>>, vector<64x128xf32>
    tpu.vector_store %arg10[%c0_13, %c0_14], %11 {strides = array<i32>} : memref<64x128xf32, #tpu.memory_space<vmem>>, vector<64x128xf32>,
    %cst_15 = arith.constant 0.000000e+00 : f32
    %13 = vector.broadcast %cst_15 : f32 to vector<8x32xf32>
    %cst_16 = arith.constant 0.000000e+00 : f32
    %14 = vector.broadcast %cst_16 : f32 to vector<8x32xf32>
    %c0_17 = arith.constant 0 : index
    %c0_18 = arith.constant 0 : index
    %15 = vector.load %arg10[%c0_17, %c0_18] : memref<64x128xf32, #tpu.memory_space<vmem>>, vector<8x128xf32>
    %cst_19 = arith.constant dense<0.000000e+00> : vector<8x128xf32>
    %16 = tpu.matmul %13, %4, %cst_19 {dimension_numbers = #tpu.dot_dimension_numbers<[1], [0], [0], [1], [0, 0, 1, 1], [], []>} : vector<8x32xf32>, vector<32x128xf32>, vector<8x128xf32> -> vector<8x128xf32>
    %17 = arith.addf %15, %16 : vector<8x128xf32>
    %18 = arith.negf %17 : vector<8x128xf32>
    %19 = math.exp %18 : vector<8x128xf32>
    %cst_20 = arith.constant 1.000000e+00 : f32
    %20 = vector.broadcast %cst_20 : f32 to vector<8x128xf32>
    %21 = arith.addf %20, %19 : vector<8x128xf32>
    %22 = arith.divf %20, %21 : vector<8x128xf32>
    %23 = math.tanh %17 : vector<8x128xf32>
    %24 = vector.extract_strided_slice %22 {offsets = [0, 0], sizes = [8, 32], strides = [1, 1]} : vector<8x128xf32> to vector<8x32xf32>
    %25 = vector.extract_strided_slice %22 {offsets = [0, 32], sizes = [8, 32], strides = [1, 1]} : vector<8x128xf32> to vector<8x32xf32>
    %26 = vector.extract_strided_slice %23 {offsets = [0, 64], sizes = [8, 32], strides = [1, 1]} : vector<8x128xf32> to vector<8x32xf32>
    %27 = vector.extract_strided_slice %22 {offsets = [0, 96], sizes = [8, 32], strides = [1, 1]} : vector<8x128xf32> to vector<8x32xf32>
    %28 = arith.mulf %25, %14 : vector<8x32xf32>
    %29 = arith.mulf %24, %26 : vector<8x32xf32>
    %30 = arith.addf %28, %29 : vector<8x32xf32>
    %31 = math.tanh %30 : vector<8x32xf32>
    %32 = arith.mulf %27, %31 : vector<8x32xf32>
    %c0_i32 = arith.constant 0 : i32
    %33 = vector.broadcast %c0_i32 : i32 to vector<8x1xi32>
    %34 = arith.cmpi sgt, %0, %33 : vector<8x1xi32>
    %35 = vector.shape_cast %34 : vector<8x1xi1> to vector<8x1xi1>
    %36 = vector.broadcast %35 : vector<8x1xi1> to vector<8x32xi1>
    %37 = arith.select %36, %32, %13 : vector<8x32xi1>, vector<8x32xf32>
    %38 = vector.shape_cast %34 : vector<8x1xi1> to vector<8x1xi1>
    %39 = vector.broadcast %38 : vector<8x1xi1> to vector<8x32xi1>
    %40 = arith.select %39, %30, %14 : vector<8x32xi1>, vector<8x32xf32>
    %c0_21 = arith.constant 0 : index
    %c0_22 = arith.constant 0 : index
    %41 = vector.load %arg9[%c0_21, %c0_22] : memref<64x32xf32, #tpu.memory_space<vmem>>, vector<8x32xf32>
    tpu.vector_store %arg9[%c0_21, %c0_22], %37 {strides = array<i32>} : memref<64x32xf32, #tpu.memory_space<vmem>>, vector<8x32xf32>,
    %c8 = arith.constant 8 : index
    %c0_23 = arith.constant 0 : index
    %42 = vector.load %arg10[%c8, %c0_23] : memref<64x128xf32, #tpu.memory_space<vmem>>, vector<8x128xf32>
    %cst_24 = arith.constant dense<0.000000e+00> : vector<8x128xf32>
    %43 = tpu.matmul %37, %4, %cst_24 {dimension_numbers = #tpu.dot_dimension_numbers<[1], [0], [0], [1], [0, 0, 1, 1], [], []>} : vector<8x32xf32>, vector<32x128xf32>, vector<8x128xf32> -> vector<8x128xf32>
    %44 = arith.addf %42, %43 : vector<8x128xf32>
    %45 = arith.negf %44 : vector<8x128xf32>
    %46 = math.exp %45 : vector<8x128xf32>
    %cst_25 = arith.constant 1.000000e+00 : f32
    %47 = vector.broadcast %cst_25 : f32 to vector<8x128xf32>
    %48 = arith.addf %47, %46 : vector<8x128xf32>
    %49 = arith.divf %47, %48 : vector<8x128xf32>
    %50 = math.tanh %44 : vector<8x128xf32>
    %51 = vector.extract_strided_slice %49 {offsets = [0, 0], sizes = [8, 32], strides = [1, 1]} : vector<8x128xf32> to vector<8x32xf32>
    %52 = vector.extract_strided_slice %49 {offsets = [0, 32], sizes = [8, 32], strides = [1, 1]} : vector<8x128xf32> to vector<8x32xf32>
    %53 = vector.extract_strided_slice %50 {offsets = [0, 64], sizes = [8, 32], strides = [1, 1]} : vector<8x128xf32> to vector<8x32xf32>
    %54 = vector.extract_strided_slice %49 {offsets = [0, 96], sizes = [8, 32], strides = [1, 1]} : vector<8x128xf32> to vector<8x32xf32>
    %55 = arith.mulf %52, %40 : vector<8x32xf32>
    %56 = arith.mulf %51, %53 : vector<8x32xf32>
    %57 = arith.addf %55, %56 : vector<8x32xf32>
    %58 = math.tanh %57 : vector<8x32xf32>
    %59 = arith.mulf %54, %58 : vector<8x32xf32>
    %c1_i32 = arith.constant 1 : i32
    %60 = vector.broadcast %c1_i32 : i32 to vector<8x1xi32>
    %61 = arith.cmpi sgt, %0, %60 : vector<8x1xi32>
    %62 = vector.shape_cast %61 : vector<8x1xi1> to vector<8x1xi1>
    %63 = vector.broadcast %62 : vector<8x1xi1> to vector<8x32xi1>
    %64 = arith.select %63, %59, %37 : vector<8x32xi1>, vector<8x32xf32>
    %65 = vector.shape_cast %61 : vector<8x1xi1> to vector<8x1xi1>
    %66 = vector.broadcast %65 : vector<8x1xi1> to vector<8x32xi1>
    %67 = arith.select %66, %57, %40 : vector<8x32xi1>, vector<8x32xf32>
    %c8_26 = arith.constant 8 : index
    %c0_27 = arith.constant 0 : index
    %68 = vector.load %arg9[%c8_26, %c0_27] : memref<64x32xf32, #tpu.memory_space<vmem>>, vector<8x32xf32>
    tpu.vector_store %arg9[%c8_26, %c0_27], %64 {strides = array<i32>} : memref<64x32xf32, #tpu.memory_space<vmem>>, vector<8x32xf32>,
    %c16 = arith.constant 16 : index
    %c0_28 = arith.constant 0 : index
    %69 = vector.load %arg10[%c16, %c0_28] : memref<64x128xf32, #tpu.memory_space<vmem>>, vector<8x128xf32>
    %cst_29 = arith.constant dense<0.000000e+00> : vector<8x128xf32>
    %70 = tpu.matmul %64, %4, %cst_29 {dimension_numbers = #tpu.dot_dimension_numbers<[1], [0], [0], [1], [0, 0, 1, 1], [], []>} : vector<8x32xf32>, vector<32x128xf32>, vector<8x128xf32> -> vector<8x128xf32>
    %71 = arith.addf %69, %70 : vector<8x128xf32>
    %72 = arith.negf %71 : vector<8x128xf32>
    %73 = math.exp %72 : vector<8x128xf32>
    %cst_30 = arith.constant 1.000000e+00 : f32
    %74 = vector.broadcast %cst_30 : f32 to vector<8x128xf32>
    %75 = arith.addf %74, %73 : vector<8x128xf32>
    %76 = arith.divf %74, %75 : vector<8x128xf32>
    %77 = math.tanh %71 : vector<8x128xf32>
    %78 = vector.extract_strided_slice %76 {offsets = [0, 0], sizes = [8, 32], strides = [1, 1]} : vector<8x128xf32> to vector<8x32xf32>
    %79 = vector.extract_strided_slice %76 {offsets = [0, 32], sizes = [8, 32], strides = [1, 1]} : vector<8x128xf32> to vector<8x32xf32>
    %80 = vector.extract_strided_slice %77 {offsets = [0, 64], sizes = [8, 32], strides = [1, 1]} : vector<8x128xf32> to vector<8x32xf32>
    %81 = vector.extract_strided_slice %76 {offsets = [0, 96], sizes = [8, 32], strides = [1, 1]} : vector<8x128xf32> to vector<8x32xf32>
    %82 = arith.mulf %79, %67 : vector<8x32xf32>
    %83 = arith.mulf %78, %80 : vector<8x32xf32>
    %84 = arith.addf %82, %83 : vector<8x32xf32>
    %85 = math.tanh %84 : vector<8x32xf32>
    %86 = arith.mulf %81, %85 : vector<8x32xf32>
    %c2_i32 = arith.constant 2 : i32
    %87 = vector.broadcast %c2_i32 : i32 to vector<8x1xi32>
    %88 = arith.cmpi sgt, %0, %87 : vector<8x1xi32>
    %89 = vector.shape_cast %88 : vector<8x1xi1> to vector<8x1xi1>
    %90 = vector.broadcast %89 : vector<8x1xi1> to vector<8x32xi1>
    %91 = arith.select %90, %86, %64 : vector<8x32xi1>, vector<8x32xf32>
    %92 = vector.shape_cast %88 : vector<8x1xi1> to vector<8x1xi1>
    %93 = vector.broadcast %92 : vector<8x1xi1> to vector<8x32xi1>
    %94 = arith.select %93, %84, %67 : vector<8x32xi1>, vector<8x32xf32>
    %c16_31 = arith.constant 16 : index
    %c0_32 = arith.constant 0 : index
    %95 = vector.load %arg9[%c16_31, %c0_32] : memref<64x32xf32, #tpu.memory_space<vmem>>, vector<8x32xf32>
    tpu.vector_store %arg9[%c16_31, %c0_32], %91 {strides = array<i32>} : memref<64x32xf32, #tpu.memory_space<vmem>>, vector<8x32xf32>,
    %c24 = arith.constant 24 : index
    %c0_33 = arith.constant 0 : index
    %96 = vector.load %arg10[%c24, %c0_33] : memref<64x128xf32, #tpu.memory_space<vmem>>, vector<8x128xf32>
    %cst_34 = arith.constant dense<0.000000e+00> : vector<8x128xf32>
    %97 = tpu.matmul %91, %4, %cst_34 {dimension_numbers = #tpu.dot_dimension_numbers<[1], [0], [0], [1], [0, 0, 1, 1], [], []>} : vector<8x32xf32>, vector<32x128xf32>, vector<8x128xf32> -> vector<8x128xf32>
    %98 = arith.addf %96, %97 : vector<8x128xf32>
    %99 = arith.negf %98 : vector<8x128xf32>
    %100 = math.exp %99 : vector<8x128xf32>
    %cst_35 = arith.constant 1.000000e+00 : f32
    %101 = vector.broadcast %cst_35 : f32 to vector<8x128xf32>
    %102 = arith.addf %101, %100 : vector<8x128xf32>
    %103 = arith.divf %101, %102 : vector<8x128xf32>
    %104 = math.tanh %98 : vector<8x128xf32>
    %105 = vector.extract_strided_slice %103 {offsets = [0, 0], sizes = [8, 32], strides = [1, 1]} : vector<8x128xf32> to vector<8x32xf32>
    %106 = vector.extract_strided_slice %103 {offsets = [0, 32], sizes = [8, 32], strides = [1, 1]} : vector<8x128xf32> to vector<8x32xf32>
    %107 = vector.extract_strided_slice %104 {offsets = [0, 64], sizes = [8, 32], strides = [1, 1]} : vector<8x128xf32> to vector<8x32xf32>
    %108 = vector.extract_strided_slice %103 {offsets = [0, 96], sizes = [8, 32], strides = [1, 1]} : vector<8x128xf32> to vector<8x32xf32>
    %109 = arith.mulf %106, %94 : vector<8x32xf32>
    %110 = arith.mulf %105, %107 : vector<8x32xf32>
    %111 = arith.addf %109, %110 : vector<8x32xf32>
    %112 = math.tanh %111 : vector<8x32xf32>
    %113 = arith.mulf %108, %112 : vector<8x32xf32>
    %c3_i32 = arith.constant 3 : i32
    %114 = vector.broadcast %c3_i32 : i32 to vector<8x1xi32>
    %115 = arith.cmpi sgt, %0, %114 : vector<8x1xi32>
    %116 = vector.shape_cast %115 : vector<8x1xi1> to vector<8x1xi1>
    %117 = vector.broadcast %116 : vector<8x1xi1> to vector<8x32xi1>
    %118 = arith.select %117, %113, %91 : vector<8x32xi1>, vector<8x32xf32>
    %119 = vector.shape_cast %115 : vector<8x1xi1> to vector<8x1xi1>
    %120 = vector.broadcast %119 : vector<8x1xi1> to vector<8x32xi1>
    %121 = arith.select %120, %111, %94 : vector<8x32xi1>, vector<8x32xf32>
    %c24_36 = arith.constant 24 : index
    %c0_37 = arith.constant 0 : index
    %122 = vector.load %arg9[%c24_36, %c0_37] : memref<64x32xf32, #tpu.memory_space<vmem>>, vector<8x32xf32>
    tpu.vector_store %arg9[%c24_36, %c0_37], %118 {strides = array<i32>} : memref<64x32xf32, #tpu.memory_space<vmem>>, vector<8x32xf32>,
    %c32 = arith.constant 32 : index
    %c0_38 = arith.constant 0 : index
    %123 = vector.load %arg10[%c32, %c0_38] : memref<64x128xf32, #tpu.memory_space<vmem>>, vector<8x128xf32>
    %cst_39 = arith.constant dense<0.000000e+00> : vector<8x128xf32>
    %124 = tpu.matmul %118, %4, %cst_39 {dimension_numbers = #tpu.dot_dimension_numbers<[1], [0], [0], [1], [0, 0, 1, 1], [], []>} : vector<8x32xf32>, vector<32x128xf32>, vector<8x128xf32> -> vector<8x128xf32>
    %125 = arith.addf %123, %124 : vector<8x128xf32>
    %126 = arith.negf %125 : vector<8x128xf32>
    %127 = math.exp %126 : vector<8x128xf32>
    %cst_40 = arith.constant 1.000000e+00 : f32
    %128 = vector.broadcast %cst_40 : f32 to vector<8x128xf32>
    %129 = arith.addf %128, %127 : vector<8x128xf32>
    %130 = arith.divf %128, %129 : vector<8x128xf32>
    %131 = math.tanh %125 : vector<8x128xf32>
    %132 = vector.extract_strided_slice %130 {offsets = [0, 0], sizes = [8, 32], strides = [1, 1]} : vector<8x128xf32> to vector<8x32xf32>
    %133 = vector.extract_strided_slice %130 {offsets = [0, 32], sizes = [8, 32], strides = [1, 1]} : vector<8x128xf32> to vector<8x32xf32>
    %134 = vector.extract_strided_slice %131 {offsets = [0, 64], sizes = [8, 32], strides = [1, 1]} : vector<8x128xf32> to vector<8x32xf32>
    %135 = vector.extract_strided_slice %130 {offsets = [0, 96], sizes = [8, 32], strides = [1, 1]} : vector<8x128xf32> to vector<8x32xf32>
    %136 = arith.mulf %133, %121 : vector<8x32xf32>
    %137 = arith.mulf %132, %134 : vector<8x32xf32>
    %138 = arith.addf %136, %137 : vector<8x32xf32>
    %139 = math.tanh %138 : vector<8x32xf32>
    %140 = arith.mulf %135, %139 : vector<8x32xf32>
    %c4_i32 = arith.constant 4 : i32
    %141 = vector.broadcast %c4_i32 : i32 to vector<8x1xi32>
    %142 = arith.cmpi sgt, %0, %141 : vector<8x1xi32>
    %143 = vector.shape_cast %142 : vector<8x1xi1> to vector<8x1xi1>
    %144 = vector.broadcast %143 : vector<8x1xi1> to vector<8x32xi1>
    %145 = arith.select %144, %140, %118 : vector<8x32xi1>, vector<8x32xf32>
    %146 = vector.shape_cast %142 : vector<8x1xi1> to vector<8x1xi1>
    %147 = vector.broadcast %146 : vector<8x1xi1> to vector<8x32xi1>
    %148 = arith.select %147, %138, %121 : vector<8x32xi1>, vector<8x32xf32>
    %c32_41 = arith.constant 32 : index
    %c0_42 = arith.constant 0 : index
    %149 = vector.load %arg9[%c32_41, %c0_42] : memref<64x32xf32, #tpu.memory_space<vmem>>, vector<8x32xf32>
    tpu.vector_store %arg9[%c32_41, %c0_42], %145 {strides = array<i32>} : memref<64x32xf32, #tpu.memory_space<vmem>>, vector<8x32xf32>,
    %c40 = arith.constant 40 : index
    %c0_43 = arith.constant 0 : index
    %150 = vector.load %arg10[%c40, %c0_43] : memref<64x128xf32, #tpu.memory_space<vmem>>, vector<8x128xf32>
    %cst_44 = arith.constant dense<0.000000e+00> : vector<8x128xf32>
    %151 = tpu.matmul %145, %4, %cst_44 {dimension_numbers = #tpu.dot_dimension_numbers<[1], [0], [0], [1], [0, 0, 1, 1], [], []>} : vector<8x32xf32>, vector<32x128xf32>, vector<8x128xf32> -> vector<8x128xf32>
    %152 = arith.addf %150, %151 : vector<8x128xf32>
    %153 = arith.negf %152 : vector<8x128xf32>
    %154 = math.exp %153 : vector<8x128xf32>
    %cst_45 = arith.constant 1.000000e+00 : f32
    %155 = vector.broadcast %cst_45 : f32 to vector<8x128xf32>
    %156 = arith.addf %155, %154 : vector<8x128xf32>
    %157 = arith.divf %155, %156 : vector<8x128xf32>
    %158 = math.tanh %152 : vector<8x128xf32>
    %159 = vector.extract_strided_slice %157 {offsets = [0, 0], sizes = [8, 32], strides = [1, 1]} : vector<8x128xf32> to vector<8x32xf32>
    %160 = vector.extract_strided_slice %157 {offsets = [0, 32], sizes = [8, 32], strides = [1, 1]} : vector<8x128xf32> to vector<8x32xf32>
    %161 = vector.extract_strided_slice %158 {offsets = [0, 64], sizes = [8, 32], strides = [1, 1]} : vector<8x128xf32> to vector<8x32xf32>
    %162 = vector.extract_strided_slice %157 {offsets = [0, 96], sizes = [8, 32], strides = [1, 1]} : vector<8x128xf32> to vector<8x32xf32>
    %163 = arith.mulf %160, %148 : vector<8x32xf32>
    %164 = arith.mulf %159, %161 : vector<8x32xf32>
    %165 = arith.addf %163, %164 : vector<8x32xf32>
    %166 = math.tanh %165 : vector<8x32xf32>
    %167 = arith.mulf %162, %166 : vector<8x32xf32>
    %c5_i32 = arith.constant 5 : i32
    %168 = vector.broadcast %c5_i32 : i32 to vector<8x1xi32>
    %169 = arith.cmpi sgt, %0, %168 : vector<8x1xi32>
    %170 = vector.shape_cast %169 : vector<8x1xi1> to vector<8x1xi1>
    %171 = vector.broadcast %170 : vector<8x1xi1> to vector<8x32xi1>
    %172 = arith.select %171, %167, %145 : vector<8x32xi1>, vector<8x32xf32>
    %173 = vector.shape_cast %169 : vector<8x1xi1> to vector<8x1xi1>
    %174 = vector.broadcast %173 : vector<8x1xi1> to vector<8x32xi1>
    %175 = arith.select %174, %165, %148 : vector<8x32xi1>, vector<8x32xf32>
    %c40_46 = arith.constant 40 : index
    %c0_47 = arith.constant 0 : index
    %176 = vector.load %arg9[%c40_46, %c0_47] : memref<64x32xf32, #tpu.memory_space<vmem>>, vector<8x32xf32>
    tpu.vector_store %arg9[%c40_46, %c0_47], %172 {strides = array<i32>} : memref<64x32xf32, #tpu.memory_space<vmem>>, vector<8x32xf32>,
    %c48 = arith.constant 48 : index
    %c0_48 = arith.constant 0 : index
    %177 = vector.load %arg10[%c48, %c0_48] : memref<64x128xf32, #tpu.memory_space<vmem>>, vector<8x128xf32>
    %cst_49 = arith.constant dense<0.000000e+00> : vector<8x128xf32>
    %178 = tpu.matmul %172, %4, %cst_49 {dimension_numbers = #tpu.dot_dimension_numbers<[1], [0], [0], [1], [0, 0, 1, 1], [], []>} : vector<8x32xf32>, vector<32x128xf32>, vector<8x128xf32> -> vector<8x128xf32>
    %179 = arith.addf %177, %178 : vector<8x128xf32>
    %180 = arith.negf %179 : vector<8x128xf32>
    %181 = math.exp %180 : vector<8x128xf32>
    %cst_50 = arith.constant 1.000000e+00 : f32
    %182 = vector.broadcast %cst_50 : f32 to vector<8x128xf32>
    %183 = arith.addf %182, %181 : vector<8x128xf32>
    %184 = arith.divf %182, %183 : vector<8x128xf32>
    %185 = math.tanh %179 : vector<8x128xf32>
    %186 = vector.extract_strided_slice %184 {offsets = [0, 0], sizes = [8, 32], strides = [1, 1]} : vector<8x128xf32> to vector<8x32xf32>
    %187 = vector.extract_strided_slice %184 {offsets = [0, 32], sizes = [8, 32], strides = [1, 1]} : vector<8x128xf32> to vector<8x32xf32>
    %188 = vector.extract_strided_slice %185 {offsets = [0, 64], sizes = [8, 32], strides = [1, 1]} : vector<8x128xf32> to vector<8x32xf32>
    %189 = vector.extract_strided_slice %184 {offsets = [0, 96], sizes = [8, 32], strides = [1, 1]} : vector<8x128xf32> to vector<8x32xf32>
    %190 = arith.mulf %187, %175 : vector<8x32xf32>
    %191 = arith.mulf %186, %188 : vector<8x32xf32>
    %192 = arith.addf %190, %191 : vector<8x32xf32>
    %193 = math.tanh %192 : vector<8x32xf32>
    %194 = arith.mulf %189, %193 : vector<8x32xf32>
    %c6_i32 = arith.constant 6 : i32
    %195 = vector.broadcast %c6_i32 : i32 to vector<8x1xi32>
    %196 = arith.cmpi sgt, %0, %195 : vector<8x1xi32>
    %197 = vector.shape_cast %196 : vector<8x1xi1> to vector<8x1xi1>
    %198 = vector.broadcast %197 : vector<8x1xi1> to vector<8x32xi1>
    %199 = arith.select %198, %194, %172 : vector<8x32xi1>, vector<8x32xf32>
    %200 = vector.shape_cast %196 : vector<8x1xi1> to vector<8x1xi1>
    %201 = vector.broadcast %200 : vector<8x1xi1> to vector<8x32xi1>
    %202 = arith.select %201, %192, %175 : vector<8x32xi1>, vector<8x32xf32>
    %c48_51 = arith.constant 48 : index
    %c0_52 = arith.constant 0 : index
    %203 = vector.load %arg9[%c48_51, %c0_52] : memref<64x32xf32, #tpu.memory_space<vmem>>, vector<8x32xf32>
    tpu.vector_store %arg9[%c48_51, %c0_52], %199 {strides = array<i32>} : memref<64x32xf32, #tpu.memory_space<vmem>>, vector<8x32xf32>,
    %c56 = arith.constant 56 : index
    %c0_53 = arith.constant 0 : index
    %204 = vector.load %arg10[%c56, %c0_53] : memref<64x128xf32, #tpu.memory_space<vmem>>, vector<8x128xf32>
    %cst_54 = arith.constant dense<0.000000e+00> : vector<8x128xf32>
    %205 = tpu.matmul %199, %4, %cst_54 {dimension_numbers = #tpu.dot_dimension_numbers<[1], [0], [0], [1], [0, 0, 1, 1], [], []>} : vector<8x32xf32>, vector<32x128xf32>, vector<8x128xf32> -> vector<8x128xf32>
    %206 = arith.addf %204, %205 : vector<8x128xf32>
    %207 = arith.negf %206 : vector<8x128xf32>
    %208 = math.exp %207 : vector<8x128xf32>
    %cst_55 = arith.constant 1.000000e+00 : f32
    %209 = vector.broadcast %cst_55 : f32 to vector<8x128xf32>
    %210 = arith.addf %209, %208 : vector<8x128xf32>
    %211 = arith.divf %209, %210 : vector<8x128xf32>
    %212 = math.tanh %206 : vector<8x128xf32>
    %213 = vector.extract_strided_slice %211 {offsets = [0, 0], sizes = [8, 32], strides = [1, 1]} : vector<8x128xf32> to vector<8x32xf32>
    %214 = vector.extract_strided_slice %211 {offsets = [0, 32], sizes = [8, 32], strides = [1, 1]} : vector<8x128xf32> to vector<8x32xf32>
    %215 = vector.extract_strided_slice %212 {offsets = [0, 64], sizes = [8, 32], strides = [1, 1]} : vector<8x128xf32> to vector<8x32xf32>
    %216 = vector.extract_strided_slice %211 {offsets = [0, 96], sizes = [8, 32], strides = [1, 1]} : vector<8x128xf32> to vector<8x32xf32>
    %217 = arith.mulf %214, %202 : vector<8x32xf32>
    %218 = arith.mulf %213, %215 : vector<8x32xf32>
    %219 = arith.addf %217, %218 : vector<8x32xf32>
    %220 = math.tanh %219 : vector<8x32xf32>
    %221 = arith.mulf %216, %220 : vector<8x32xf32>
    %c7_i32 = arith.constant 7 : i32
    %222 = vector.broadcast %c7_i32 : i32 to vector<8x1xi32>
    %223 = arith.cmpi sgt, %0, %222 : vector<8x1xi32>
    %224 = vector.shape_cast %223 : vector<8x1xi1> to vector<8x1xi1>
    %225 = vector.broadcast %224 : vector<8x1xi1> to vector<8x32xi1>
    %226 = arith.select %225, %221, %199 : vector<8x32xi1>, vector<8x32xf32>
    %c56_56 = arith.constant 56 : index
    %c0_57 = arith.constant 0 : index
    %227 = vector.load %arg9[%c56_56, %c0_57] : memref<64x32xf32, #tpu.memory_space<vmem>>, vector<8x32xf32>
    tpu.vector_store %arg9[%c56_56, %c0_57], %226 {strides = array<i32>} : memref<64x32xf32, #tpu.memory_space<vmem>>, vector<8x32xf32>,
    %c1 = arith.constant 1 : index
    %c0_58 = arith.constant 0 : index
    %c0_59 = arith.constant 0 : index
    %228 = vector.load %arg3[%c1, %c0_58, %c0_59] : memref<2x32x128xf32, #tpu.memory_space<vmem>>, vector<1x32x128xf32>
    %229 = vector.shape_cast %228 : vector<1x32x128xf32> to vector<32x128xf32>
    %c1_60 = arith.constant 1 : index
    %c0_61 = arith.constant 0 : index
    %c0_62 = arith.constant 0 : index
    %230 = vector.load %arg4[%c1_60, %c0_61, %c0_62] : memref<2x32x128xf32, #tpu.memory_space<vmem>>, vector<1x32x128xf32>
    %231 = vector.shape_cast %230 : vector<1x32x128xf32> to vector<32x128xf32>
    %c0_63 = arith.constant 0 : index
    %c0_64 = arith.constant 0 : index
    %232 = vector.load %arg9[%c0_63, %c0_64] : memref<64x32xf32, #tpu.memory_space<vmem>>, vector<64x32xf32>
    %cst_65 = arith.constant dense<0.000000e+00> : vector<64x128xf32>
    %233 = tpu.matmul %232, %229, %cst_65 {dimension_numbers = #tpu.dot_dimension_numbers<[1], [0], [0], [1], [0, 0, 1, 1], [], []>} : vector<64x32xf32>, vector<32x128xf32>, vector<64x128xf32> -> vector<64x128xf32>
    %c1_66 = arith.constant 1 : index
    %c0_67 = arith.constant 0 : index
    %c0_68 = arith.constant 0 : index
    %234 = vector.load %arg5[%c1_66, %c0_67, %c0_68] : memref<2x1x128xf32, #tpu.memory_space<vmem>>, vector<1x1x128xf32>
    %235 = vector.shape_cast %234 : vector<1x1x128xf32> to vector<1x128xf32>
    %236 = vector.broadcast %235 : vector<1x128xf32> to vector<64x128xf32>
    %237 = arith.addf %233, %236 : vector<64x128xf32>
    %c0_69 = arith.constant 0 : index
    %c0_70 = arith.constant 0 : index
    %238 = vector.load %arg10[%c0_69, %c0_70] : memref<64x128xf32, #tpu.memory_space<vmem>>, vector<64x128xf32>
    tpu.vector_store %arg10[%c0_69, %c0_70], %237 {strides = array<i32>} : memref<64x128xf32, #tpu.memory_space<vmem>>, vector<64x128xf32>,
    %cst_71 = arith.constant 0.000000e+00 : f32
    %239 = vector.broadcast %cst_71 : f32 to vector<8x32xf32>
    %cst_72 = arith.constant 0.000000e+00 : f32
    %240 = vector.broadcast %cst_72 : f32 to vector<8x32xf32>
    %c0_73 = arith.constant 0 : index
    %c0_74 = arith.constant 0 : index
    %241 = vector.load %arg10[%c0_73, %c0_74] : memref<64x128xf32, #tpu.memory_space<vmem>>, vector<8x128xf32>
    %cst_75 = arith.constant dense<0.000000e+00> : vector<8x128xf32>
    %242 = tpu.matmul %239, %231, %cst_75 {dimension_numbers = #tpu.dot_dimension_numbers<[1], [0], [0], [1], [0, 0, 1, 1], [], []>} : vector<8x32xf32>, vector<32x128xf32>, vector<8x128xf32> -> vector<8x128xf32>
    %243 = arith.addf %241, %242 : vector<8x128xf32>
    %244 = arith.negf %243 : vector<8x128xf32>
    %245 = math.exp %244 : vector<8x128xf32>
    %cst_76 = arith.constant 1.000000e+00 : f32
    %246 = vector.broadcast %cst_76 : f32 to vector<8x128xf32>
    %247 = arith.addf %246, %245 : vector<8x128xf32>
    %248 = arith.divf %246, %247 : vector<8x128xf32>
    %249 = math.tanh %243 : vector<8x128xf32>
    %250 = vector.extract_strided_slice %248 {offsets = [0, 0], sizes = [8, 32], strides = [1, 1]} : vector<8x128xf32> to vector<8x32xf32>
    %251 = vector.extract_strided_slice %248 {offsets = [0, 32], sizes = [8, 32], strides = [1, 1]} : vector<8x128xf32> to vector<8x32xf32>
    %252 = vector.extract_strided_slice %249 {offsets = [0, 64], sizes = [8, 32], strides = [1, 1]} : vector<8x128xf32> to vector<8x32xf32>
    %253 = vector.extract_strided_slice %248 {offsets = [0, 96], sizes = [8, 32], strides = [1, 1]} : vector<8x128xf32> to vector<8x32xf32>
    %254 = arith.mulf %251, %240 : vector<8x32xf32>
    %255 = arith.mulf %250, %252 : vector<8x32xf32>
    %256 = arith.addf %254, %255 : vector<8x32xf32>
    %257 = math.tanh %256 : vector<8x32xf32>
    %258 = arith.mulf %253, %257 : vector<8x32xf32>
    %c0_i32_77 = arith.constant 0 : i32
    %259 = vector.broadcast %c0_i32_77 : i32 to vector<8x1xi32>
    %260 = arith.cmpi sgt, %0, %259 : vector<8x1xi32>
    %261 = vector.shape_cast %260 : vector<8x1xi1> to vector<8x1xi1>
    %262 = vector.broadcast %261 : vector<8x1xi1> to vector<8x32xi1>
    %263 = arith.select %262, %258, %239 : vector<8x32xi1>, vector<8x32xf32>
    %264 = vector.shape_cast %260 : vector<8x1xi1> to vector<8x1xi1>
    %265 = vector.broadcast %264 : vector<8x1xi1> to vector<8x32xi1>
    %266 = arith.select %265, %256, %240 : vector<8x32xi1>, vector<8x32xf32>
    %c8_78 = arith.constant 8 : index
    %c0_79 = arith.constant 0 : index
    %267 = vector.load %arg10[%c8_78, %c0_79] : memref<64x128xf32, #tpu.memory_space<vmem>>, vector<8x128xf32>
    %cst_80 = arith.constant dense<0.000000e+00> : vector<8x128xf32>
    %268 = tpu.matmul %263, %231, %cst_80 {dimension_numbers = #tpu.dot_dimension_numbers<[1], [0], [0], [1], [0, 0, 1, 1], [], []>} : vector<8x32xf32>, vector<32x128xf32>, vector<8x128xf32> -> vector<8x128xf32>
    %269 = arith.addf %267, %268 : vector<8x128xf32>
    %270 = arith.negf %269 : vector<8x128xf32>
    %271 = math.exp %270 : vector<8x128xf32>
    %cst_81 = arith.constant 1.000000e+00 : f32
    %272 = vector.broadcast %cst_81 : f32 to vector<8x128xf32>
    %273 = arith.addf %272, %271 : vector<8x128xf32>
    %274 = arith.divf %272, %273 : vector<8x128xf32>
    %275 = math.tanh %269 : vector<8x128xf32>
    %276 = vector.extract_strided_slice %274 {offsets = [0, 0], sizes = [8, 32], strides = [1, 1]} : vector<8x128xf32> to vector<8x32xf32>
    %277 = vector.extract_strided_slice %274 {offsets = [0, 32], sizes = [8, 32], strides = [1, 1]} : vector<8x128xf32> to vector<8x32xf32>
    %278 = vector.extract_strided_slice %275 {offsets = [0, 64], sizes = [8, 32], strides = [1, 1]} : vector<8x128xf32> to vector<8x32xf32>
    %279 = vector.extract_strided_slice %274 {offsets = [0, 96], sizes = [8, 32], strides = [1, 1]} : vector<8x128xf32> to vector<8x32xf32>
    %280 = arith.mulf %277, %266 : vector<8x32xf32>
    %281 = arith.mulf %276, %278 : vector<8x32xf32>
    %282 = arith.addf %280, %281 : vector<8x32xf32>
    %283 = math.tanh %282 : vector<8x32xf32>
    %284 = arith.mulf %279, %283 : vector<8x32xf32>
    %c1_i32_82 = arith.constant 1 : i32
    %285 = vector.broadcast %c1_i32_82 : i32 to vector<8x1xi32>
    %286 = arith.cmpi sgt, %0, %285 : vector<8x1xi32>
    %287 = vector.shape_cast %286 : vector<8x1xi1> to vector<8x1xi1>
    %288 = vector.broadcast %287 : vector<8x1xi1> to vector<8x32xi1>
    %289 = arith.select %288, %284, %263 : vector<8x32xi1>, vector<8x32xf32>
    %290 = vector.shape_cast %286 : vector<8x1xi1> to vector<8x1xi1>
    %291 = vector.broadcast %290 : vector<8x1xi1> to vector<8x32xi1>
    %292 = arith.select %291, %282, %266 : vector<8x32xi1>, vector<8x32xf32>
    %c16_83 = arith.constant 16 : index
    %c0_84 = arith.constant 0 : index
    %293 = vector.load %arg10[%c16_83, %c0_84] : memref<64x128xf32, #tpu.memory_space<vmem>>, vector<8x128xf32>
    %cst_85 = arith.constant dense<0.000000e+00> : vector<8x128xf32>
    %294 = tpu.matmul %289, %231, %cst_85 {dimension_numbers = #tpu.dot_dimension_numbers<[1], [0], [0], [1], [0, 0, 1, 1], [], []>} : vector<8x32xf32>, vector<32x128xf32>, vector<8x128xf32> -> vector<8x128xf32>
    %295 = arith.addf %293, %294 : vector<8x128xf32>
    %296 = arith.negf %295 : vector<8x128xf32>
    %297 = math.exp %296 : vector<8x128xf32>
    %cst_86 = arith.constant 1.000000e+00 : f32
    %298 = vector.broadcast %cst_86 : f32 to vector<8x128xf32>
    %299 = arith.addf %298, %297 : vector<8x128xf32>
    %300 = arith.divf %298, %299 : vector<8x128xf32>
    %301 = math.tanh %295 : vector<8x128xf32>
    %302 = vector.extract_strided_slice %300 {offsets = [0, 0], sizes = [8, 32], strides = [1, 1]} : vector<8x128xf32> to vector<8x32xf32>
    %303 = vector.extract_strided_slice %300 {offsets = [0, 32], sizes = [8, 32], strides = [1, 1]} : vector<8x128xf32> to vector<8x32xf32>
    %304 = vector.extract_strided_slice %301 {offsets = [0, 64], sizes = [8, 32], strides = [1, 1]} : vector<8x128xf32> to vector<8x32xf32>
    %305 = vector.extract_strided_slice %300 {offsets = [0, 96], sizes = [8, 32], strides = [1, 1]} : vector<8x128xf32> to vector<8x32xf32>
    %306 = arith.mulf %303, %292 : vector<8x32xf32>
    %307 = arith.mulf %302, %304 : vector<8x32xf32>
    %308 = arith.addf %306, %307 : vector<8x32xf32>
    %309 = math.tanh %308 : vector<8x32xf32>
    %310 = arith.mulf %305, %309 : vector<8x32xf32>
    %c2_i32_87 = arith.constant 2 : i32
    %311 = vector.broadcast %c2_i32_87 : i32 to vector<8x1xi32>
    %312 = arith.cmpi sgt, %0, %311 : vector<8x1xi32>
    %313 = vector.shape_cast %312 : vector<8x1xi1> to vector<8x1xi1>
    %314 = vector.broadcast %313 : vector<8x1xi1> to vector<8x32xi1>
    %315 = arith.select %314, %310, %289 : vector<8x32xi1>, vector<8x32xf32>
    %316 = vector.shape_cast %312 : vector<8x1xi1> to vector<8x1xi1>
    %317 = vector.broadcast %316 : vector<8x1xi1> to vector<8x32xi1>
    %318 = arith.select %317, %308, %292 : vector<8x32xi1>, vector<8x32xf32>
    %c24_88 = arith.constant 24 : index
    %c0_89 = arith.constant 0 : index
    %319 = vector.load %arg10[%c24_88, %c0_89] : memref<64x128xf32, #tpu.memory_space<vmem>>, vector<8x128xf32>
    %cst_90 = arith.constant dense<0.000000e+00> : vector<8x128xf32>
    %320 = tpu.matmul %315, %231, %cst_90 {dimension_numbers = #tpu.dot_dimension_numbers<[1], [0], [0], [1], [0, 0, 1, 1], [], []>} : vector<8x32xf32>, vector<32x128xf32>, vector<8x128xf32> -> vector<8x128xf32>
    %321 = arith.addf %319, %320 : vector<8x128xf32>
    %322 = arith.negf %321 : vector<8x128xf32>
    %323 = math.exp %322 : vector<8x128xf32>
    %cst_91 = arith.constant 1.000000e+00 : f32
    %324 = vector.broadcast %cst_91 : f32 to vector<8x128xf32>
    %325 = arith.addf %324, %323 : vector<8x128xf32>
    %326 = arith.divf %324, %325 : vector<8x128xf32>
    %327 = math.tanh %321 : vector<8x128xf32>
    %328 = vector.extract_strided_slice %326 {offsets = [0, 0], sizes = [8, 32], strides = [1, 1]} : vector<8x128xf32> to vector<8x32xf32>
    %329 = vector.extract_strided_slice %326 {offsets = [0, 32], sizes = [8, 32], strides = [1, 1]} : vector<8x128xf32> to vector<8x32xf32>
    %330 = vector.extract_strided_slice %327 {offsets = [0, 64], sizes = [8, 32], strides = [1, 1]} : vector<8x128xf32> to vector<8x32xf32>
    %331 = vector.extract_strided_slice %326 {offsets = [0, 96], sizes = [8, 32], strides = [1, 1]} : vector<8x128xf32> to vector<8x32xf32>
    %332 = arith.mulf %329, %318 : vector<8x32xf32>
    %333 = arith.mulf %328, %330 : vector<8x32xf32>
    %334 = arith.addf %332, %333 : vector<8x32xf32>
    %335 = math.tanh %334 : vector<8x32xf32>
    %336 = arith.mulf %331, %335 : vector<8x32xf32>
    %c3_i32_92 = arith.constant 3 : i32
    %337 = vector.broadcast %c3_i32_92 : i32 to vector<8x1xi32>
    %338 = arith.cmpi sgt, %0, %337 : vector<8x1xi32>
    %339 = vector.shape_cast %338 : vector<8x1xi1> to vector<8x1xi1>
    %340 = vector.broadcast %339 : vector<8x1xi1> to vector<8x32xi1>
    %341 = arith.select %340, %336, %315 : vector<8x32xi1>, vector<8x32xf32>
    %342 = vector.shape_cast %338 : vector<8x1xi1> to vector<8x1xi1>
    %343 = vector.broadcast %342 : vector<8x1xi1> to vector<8x32xi1>
    %344 = arith.select %343, %334, %318 : vector<8x32xi1>, vector<8x32xf32>
    %c32_93 = arith.constant 32 : index
    %c0_94 = arith.constant 0 : index
    %345 = vector.load %arg10[%c32_93, %c0_94] : memref<64x128xf32, #tpu.memory_space<vmem>>, vector<8x128xf32>
    %cst_95 = arith.constant dense<0.000000e+00> : vector<8x128xf32>
    %346 = tpu.matmul %341, %231, %cst_95 {dimension_numbers = #tpu.dot_dimension_numbers<[1], [0], [0], [1], [0, 0, 1, 1], [], []>} : vector<8x32xf32>, vector<32x128xf32>, vector<8x128xf32> -> vector<8x128xf32>
    %347 = arith.addf %345, %346 : vector<8x128xf32>
    %348 = arith.negf %347 : vector<8x128xf32>
    %349 = math.exp %348 : vector<8x128xf32>
    %cst_96 = arith.constant 1.000000e+00 : f32
    %350 = vector.broadcast %cst_96 : f32 to vector<8x128xf32>
    %351 = arith.addf %350, %349 : vector<8x128xf32>
    %352 = arith.divf %350, %351 : vector<8x128xf32>
    %353 = math.tanh %347 : vector<8x128xf32>
    %354 = vector.extract_strided_slice %352 {offsets = [0, 0], sizes = [8, 32], strides = [1, 1]} : vector<8x128xf32> to vector<8x32xf32>
    %355 = vector.extract_strided_slice %352 {offsets = [0, 32], sizes = [8, 32], strides = [1, 1]} : vector<8x128xf32> to vector<8x32xf32>
    %356 = vector.extract_strided_slice %353 {offsets = [0, 64], sizes = [8, 32], strides = [1, 1]} : vector<8x128xf32> to vector<8x32xf32>
    %357 = vector.extract_strided_slice %352 {offsets = [0, 96], sizes = [8, 32], strides = [1, 1]} : vector<8x128xf32> to vector<8x32xf32>
    %358 = arith.mulf %355, %344 : vector<8x32xf32>
    %359 = arith.mulf %354, %356 : vector<8x32xf32>
    %360 = arith.addf %358, %359 : vector<8x32xf32>
    %361 = math.tanh %360 : vector<8x32xf32>
    %362 = arith.mulf %357, %361 : vector<8x32xf32>
    %c4_i32_97 = arith.constant 4 : i32
    %363 = vector.broadcast %c4_i32_97 : i32 to vector<8x1xi32>
    %364 = arith.cmpi sgt, %0, %363 : vector<8x1xi32>
    %365 = vector.shape_cast %364 : vector<8x1xi1> to vector<8x1xi1>
    %366 = vector.broadcast %365 : vector<8x1xi1> to vector<8x32xi1>
    %367 = arith.select %366, %362, %341 : vector<8x32xi1>, vector<8x32xf32>
    %368 = vector.shape_cast %364 : vector<8x1xi1> to vector<8x1xi1>
    %369 = vector.broadcast %368 : vector<8x1xi1> to vector<8x32xi1>
    %370 = arith.select %369, %360, %344 : vector<8x32xi1>, vector<8x32xf32>
    %c40_98 = arith.constant 40 : index
    %c0_99 = arith.constant 0 : index
    %371 = vector.load %arg10[%c40_98, %c0_99] : memref<64x128xf32, #tpu.memory_space<vmem>>, vector<8x128xf32>
    %cst_100 = arith.constant dense<0.000000e+00> : vector<8x128xf32>
    %372 = tpu.matmul %367, %231, %cst_100 {dimension_numbers = #tpu.dot_dimension_numbers<[1], [0], [0], [1], [0, 0, 1, 1], [], []>} : vector<8x32xf32>, vector<32x128xf32>, vector<8x128xf32> -> vector<8x128xf32>
    %373 = arith.addf %371, %372 : vector<8x128xf32>
    %374 = arith.negf %373 : vector<8x128xf32>
    %375 = math.exp %374 : vector<8x128xf32>
    %cst_101 = arith.constant 1.000000e+00 : f32
    %376 = vector.broadcast %cst_101 : f32 to vector<8x128xf32>
    %377 = arith.addf %376, %375 : vector<8x128xf32>
    %378 = arith.divf %376, %377 : vector<8x128xf32>
    %379 = math.tanh %373 : vector<8x128xf32>
    %380 = vector.extract_strided_slice %378 {offsets = [0, 0], sizes = [8, 32], strides = [1, 1]} : vector<8x128xf32> to vector<8x32xf32>
    %381 = vector.extract_strided_slice %378 {offsets = [0, 32], sizes = [8, 32], strides = [1, 1]} : vector<8x128xf32> to vector<8x32xf32>
    %382 = vector.extract_strided_slice %379 {offsets = [0, 64], sizes = [8, 32], strides = [1, 1]} : vector<8x128xf32> to vector<8x32xf32>
    %383 = vector.extract_strided_slice %378 {offsets = [0, 96], sizes = [8, 32], strides = [1, 1]} : vector<8x128xf32> to vector<8x32xf32>
    %384 = arith.mulf %381, %370 : vector<8x32xf32>
    %385 = arith.mulf %380, %382 : vector<8x32xf32>
    %386 = arith.addf %384, %385 : vector<8x32xf32>
    %387 = math.tanh %386 : vector<8x32xf32>
    %388 = arith.mulf %383, %387 : vector<8x32xf32>
    %c5_i32_102 = arith.constant 5 : i32
    %389 = vector.broadcast %c5_i32_102 : i32 to vector<8x1xi32>
    %390 = arith.cmpi sgt, %0, %389 : vector<8x1xi32>
    %391 = vector.shape_cast %390 : vector<8x1xi1> to vector<8x1xi1>
    %392 = vector.broadcast %391 : vector<8x1xi1> to vector<8x32xi1>
    %393 = arith.select %392, %388, %367 : vector<8x32xi1>, vector<8x32xf32>
    %394 = vector.shape_cast %390 : vector<8x1xi1> to vector<8x1xi1>
    %395 = vector.broadcast %394 : vector<8x1xi1> to vector<8x32xi1>
    %396 = arith.select %395, %386, %370 : vector<8x32xi1>, vector<8x32xf32>
    %c48_103 = arith.constant 48 : index
    %c0_104 = arith.constant 0 : index
    %397 = vector.load %arg10[%c48_103, %c0_104] : memref<64x128xf32, #tpu.memory_space<vmem>>, vector<8x128xf32>
    %cst_105 = arith.constant dense<0.000000e+00> : vector<8x128xf32>
    %398 = tpu.matmul %393, %231, %cst_105 {dimension_numbers = #tpu.dot_dimension_numbers<[1], [0], [0], [1], [0, 0, 1, 1], [], []>} : vector<8x32xf32>, vector<32x128xf32>, vector<8x128xf32> -> vector<8x128xf32>
    %399 = arith.addf %397, %398 : vector<8x128xf32>
    %400 = arith.negf %399 : vector<8x128xf32>
    %401 = math.exp %400 : vector<8x128xf32>
    %cst_106 = arith.constant 1.000000e+00 : f32
    %402 = vector.broadcast %cst_106 : f32 to vector<8x128xf32>
    %403 = arith.addf %402, %401 : vector<8x128xf32>
    %404 = arith.divf %402, %403 : vector<8x128xf32>
    %405 = math.tanh %399 : vector<8x128xf32>
    %406 = vector.extract_strided_slice %404 {offsets = [0, 0], sizes = [8, 32], strides = [1, 1]} : vector<8x128xf32> to vector<8x32xf32>
    %407 = vector.extract_strided_slice %404 {offsets = [0, 32], sizes = [8, 32], strides = [1, 1]} : vector<8x128xf32> to vector<8x32xf32>
    %408 = vector.extract_strided_slice %405 {offsets = [0, 64], sizes = [8, 32], strides = [1, 1]} : vector<8x128xf32> to vector<8x32xf32>
    %409 = vector.extract_strided_slice %404 {offsets = [0, 96], sizes = [8, 32], strides = [1, 1]} : vector<8x128xf32> to vector<8x32xf32>
    %410 = arith.mulf %407, %396 : vector<8x32xf32>
    %411 = arith.mulf %406, %408 : vector<8x32xf32>
    %412 = arith.addf %410, %411 : vector<8x32xf32>
    %413 = math.tanh %412 : vector<8x32xf32>
    %414 = arith.mulf %409, %413 : vector<8x32xf32>
    %c6_i32_107 = arith.constant 6 : i32
    %415 = vector.broadcast %c6_i32_107 : i32 to vector<8x1xi32>
    %416 = arith.cmpi sgt, %0, %415 : vector<8x1xi32>
    %417 = vector.shape_cast %416 : vector<8x1xi1> to vector<8x1xi1>
    %418 = vector.broadcast %417 : vector<8x1xi1> to vector<8x32xi1>
    %419 = arith.select %418, %414, %393 : vector<8x32xi1>, vector<8x32xf32>
    %420 = vector.shape_cast %416 : vector<8x1xi1> to vector<8x1xi1>
    %421 = vector.broadcast %420 : vector<8x1xi1> to vector<8x32xi1>
    %422 = arith.select %421, %412, %396 : vector<8x32xi1>, vector<8x32xf32>
    %c56_108 = arith.constant 56 : index
    %c0_109 = arith.constant 0 : index
    %423 = vector.load %arg10[%c56_108, %c0_109] : memref<64x128xf32, #tpu.memory_space<vmem>>, vector<8x128xf32>
    %cst_110 = arith.constant dense<0.000000e+00> : vector<8x128xf32>
    %424 = tpu.matmul %419, %231, %cst_110 {dimension_numbers = #tpu.dot_dimension_numbers<[1], [0], [0], [1], [0, 0, 1, 1], [], []>} : vector<8x32xf32>, vector<32x128xf32>, vector<8x128xf32> -> vector<8x128xf32>
    %425 = arith.addf %423, %424 : vector<8x128xf32>
    %426 = arith.negf %425 : vector<8x128xf32>
    %427 = math.exp %426 : vector<8x128xf32>
    %cst_111 = arith.constant 1.000000e+00 : f32
    %428 = vector.broadcast %cst_111 : f32 to vector<8x128xf32>
    %429 = arith.addf %428, %427 : vector<8x128xf32>
    %430 = arith.divf %428, %429 : vector<8x128xf32>
    %431 = math.tanh %425 : vector<8x128xf32>
    %432 = vector.extract_strided_slice %430 {offsets = [0, 0], sizes = [8, 32], strides = [1, 1]} : vector<8x128xf32> to vector<8x32xf32>
    %433 = vector.extract_strided_slice %430 {offsets = [0, 32], sizes = [8, 32], strides = [1, 1]} : vector<8x128xf32> to vector<8x32xf32>
    %434 = vector.extract_strided_slice %431 {offsets = [0, 64], sizes = [8, 32], strides = [1, 1]} : vector<8x128xf32> to vector<8x32xf32>
    %435 = vector.extract_strided_slice %430 {offsets = [0, 96], sizes = [8, 32], strides = [1, 1]} : vector<8x128xf32> to vector<8x32xf32>
    %436 = arith.mulf %433, %422 : vector<8x32xf32>
    %437 = arith.mulf %432, %434 : vector<8x32xf32>
    %438 = arith.addf %436, %437 : vector<8x32xf32>
    %439 = math.tanh %438 : vector<8x32xf32>
    %440 = arith.mulf %435, %439 : vector<8x32xf32>
    %c7_i32_112 = arith.constant 7 : i32
    %441 = vector.broadcast %c7_i32_112 : i32 to vector<8x1xi32>
    %442 = arith.cmpi sgt, %0, %441 : vector<8x1xi32>
    %443 = vector.shape_cast %442 : vector<8x1xi1> to vector<8x1xi1>
    %444 = vector.broadcast %443 : vector<8x1xi1> to vector<8x32xi1>
    %445 = arith.select %444, %440, %419 : vector<8x32xi1>, vector<8x32xf32>
    %c0_113 = arith.constant 0 : index
    %c0_114 = arith.constant 0 : index
    %446 = vector.load %arg6[%c0_113, %c0_114] : memref<1x32xf32, #tpu.memory_space<vmem>>, vector<1x32xf32>
    %447 = vector.broadcast %446 : vector<1x32xf32> to vector<8x32xf32>
    %448 = arith.mulf %445, %447 : vector<8x32xf32>
    %cst_115 = arith.constant dense<0.000000e+00> : vector<8xf32>
    %449 = vector.multi_reduction <add>, %448, %cst_115 [1] : vector<8x32xf32> to vector<8xf32>
    %450 = vector.shape_cast %449 : vector<8xf32> to vector<8x1xf32>
    %c0_116 = arith.constant 0 : index
    %c0_117 = arith.constant 0 : index
    %451 = vector.load %arg7[%c0_116, %c0_117] : memref<1x1xf32, #tpu.memory_space<vmem>>, vector<1x1xf32>
    %452 = vector.broadcast %451 : vector<1x1xf32> to vector<8x1xf32>
    %453 = arith.addf %450, %452 : vector<8x1xf32>
    %454 = arith.negf %453 : vector<8x1xf32>
    %455 = math.exp %454 : vector<8x1xf32>
    %cst_118 = arith.constant 1.000000e+00 : f32
    %456 = vector.broadcast %cst_118 : f32 to vector<8x1xf32>
    %457 = arith.addf %456, %455 : vector<8x1xf32>
    %458 = arith.divf %456, %457 : vector<8x1xf32>
    %c0_119 = arith.constant 0 : index
    %c0_120 = arith.constant 0 : index
    %459 = vector.load %arg8[%c0_119, %c0_120] : memref<8x1xf32, #tpu.memory_space<vmem>>, vector<8x1xf32>
    tpu.vector_store %arg8[%c0_119, %c0_120], %458 {strides = array<i32>} : memref<8x1xf32, #tpu.memory_space<vmem>>, vector<8x1xf32>,
    return
  }
  func.func @transform_0(%arg0: i32) -> (i32, i32, i32) {
    %c0_i32 = arith.constant 0 : i32
    %c0_i32_0 = arith.constant 0 : i32
    %c0_i32_1 = arith.constant 0 : i32
    return %c0_i32, %arg0, %c0_i32_0 : i32, i32, i32
  }
  func.func @transform_1(%arg0: i32) -> (i32, i32) {
    %c0_i32 = arith.constant 0 : i32
    %c0_i32_0 = arith.constant 0 : i32
    return %arg0, %c0_i32 : i32, i32
  }
  func.func @transform_2(%arg0: i32) -> (i32, i32, i32) {
    %c0_i32 = arith.constant 0 : i32
    %c0_i32_0 = arith.constant 0 : i32
    %c0_i32_1 = arith.constant 0 : i32
    %c0_i32_2 = arith.constant 0 : i32
    return %c0_i32, %c0_i32_0, %c0_i32_1 : i32, i32, i32
  }
  func.func @transform_3(%arg0: i32) -> (i32, i32, i32) {
    %c0_i32 = arith.constant 0 : i32
    %c0_i32_0 = arith.constant 0 : i32
    %c0_i32_1 = arith.constant 0 : i32
    %c0_i32_2 = arith.constant 0 : i32
    return %c0_i32, %c0_i32_0, %c0_i32_1 : i32, i32, i32
  }
  func.func @transform_4(%arg0: i32) -> (i32, i32, i32) {
    %c0_i32 = arith.constant 0 : i32
    %c0_i32_0 = arith.constant 0 : i32
    %c0_i32_1 = arith.constant 0 : i32
    %c0_i32_2 = arith.constant 0 : i32
    return %c0_i32, %c0_i32_0, %c0_i32_1 : i32, i32, i32
  }
  func.func @transform_5(%arg0: i32) -> (i32, i32) {
    %c0_i32 = arith.constant 0 : i32
    %c0_i32_0 = arith.constant 0 : i32
    %c0_i32_1 = arith.constant 0 : i32
    return %c0_i32, %c0_i32_0 : i32, i32
  }
  func.func @transform_6(%arg0: i32) -> (i32, i32) {
    %c0_i32 = arith.constant 0 : i32
    %c0_i32_0 = arith.constant 0 : i32
    %c0_i32_1 = arith.constant 0 : i32
    return %c0_i32, %c0_i32_0 : i32, i32
  }
  func.func @transform_7(%arg0: i32) -> (i32, i32) {
    %c0_i32 = arith.constant 0 : i32
    %c0_i32_0 = arith.constant 0 : i32
    return %arg0, %c0_i32 : i32, i32
  }
}

</mosaic_0001>

<bundles_post_ra>
// kernel: tpu_custom_call.1
= control target key start
LH: loop header
LB: loop body
LE: loop exit
PB: predicated region body
PF: predicated region fallthrough
CT: control target
= control target key end

     0   :  { %s3251_s0 = inlined_call_operand.hbm [shape: f32[8,8,32], index: 0, kind: input, shape index: {}]   ;;  %s3252_s1 = inlined_call_operand.vmem [shape: s32[8,1], index: 1, kind: input, shape index: {}]   ;;  %s3253_s2 = inlined_call_operand.hbm [shape: f32[2,32,128], index: 2, kind: input, shape index: {}]   ;;  %s3254_s3 = inlined_call_operand.hbm [shape: f32[2,32,128], index: 3, kind: input, shape index: {}]   ;;  %s3255_s4 = inlined_call_operand.vmem [shape: f32[2,1,128], index: 4, kind: input, shape index: {}]   ;;  %s3256_s5 = inlined_call_operand.vmem [shape: f32[1,32], index: 5, kind: input, shape index: {}]   ;;  %s3257_s6 = inlined_call_operand.<no memory space> [shape: f32[1,1], index: 6, kind: input, shape index: {}]   ;;  %s3258_s7 = inlined_call_operand.vmem [shape: f32[8,1], index: 7, kind: output, shape index: {}]  }
   0x1   :  { %v12_v0 = vstv %s3257_s6 }
   0x2   :  { %13 = vst [vmem:[#allocation4] sm:$0x1] %v12_v0 }
   0x3   :  { %14 = vsyncpa [#allocation6], 0 }
   0x4   :  { %15 = vsyncpa [#allocation8], 0  ;;  %s2720_s26 = smov [#allocation7]   ;;  %s2721_s28 = smov [#allocation5]  }
   0x5   :  { %s35_s27 = sshll.u32 %s2720_s26, 4  ;;  %s21_s29 = sshll.u32 %s2721_s28, 4  ;;  %s36_s27 = int_to_ptr.vmem [resolvable:$true] %s35_s27  ;;  %s22_s29 = int_to_ptr.vmem [resolvable:$true] %s21_s29 }
   0x6   :  { %s2664_s30 = scalar_lea.vmem %s36_s27, 1024  ;;  %p2669_p1 = scmp.lt.s32.totalorder %s36_s27, %s36_s27 }
   0x7   :  { %p2665_p0 = scmp.ne.s32.totalorder %s36_s27, %s2664_s30  ;;  %p2670_p2 = scmp.lt.s32.totalorder %s2664_s30, %s2664_s30 }
   0x9   :  { %p2671_p3 = por %p2670_p2, %p2669_p1 }
   0xb   :  { %p2672_p4 = pnand %p2671_p3, %p2665_p0 }
   0xd   :  { %2675 = shalt.err (!%p2672_p4)
}
   0xe   :  { %s2722_s8 = smov 128   ;;  %s2723_s9 = smov 8  }
   0xf   :  { %41 = dma.hbm_to_vmem [thread:$0]  %s3253_s2, 1024, %s36_s27, [#allocation8], %s2722_s8, %s2722_s8, %s2723_s9  }
  0x10   :  { %s2684_s11 = scalar_lea.vmem %s22_s29, 1024  ;;  %p2689_p6 = scmp.lt.s32.totalorder %s22_s29, %s22_s29 }
  0x11   :  { %p2685_p5 = scmp.ne.s32.totalorder %s22_s29, %s2684_s11  ;;  %p2690_p7 = scmp.lt.s32.totalorder %s2684_s11, %s2684_s11 }
  0x13   :  { %p2691_p8 = por %p2690_p7, %p2689_p6 }
  0x15   :  { %p2692_p9 = pnand %p2691_p8, %p2685_p5 }
  0x17   :  { %2695 = shalt.err (!%p2692_p9)
}
  0x18   :  { %27 = dma.hbm_to_vmem [thread:$0]  %s3251_s0, 1024, %s22_s29, [#allocation6], %s2722_s8, %s2722_s8, %s2723_s9  }
  0x19   :  { %s2724_s14 = smov [#allocation9]  }
  0x1a   :  { %s47_s15 = sshll.u32 %s2724_s14, 4  ;;  %s48_s15 = int_to_ptr.vmem [resolvable:$true] %s47_s15 }
  0x1b   :  { %s2704_s16 = scalar_lea.vmem %s48_s15, 1024  ;;  %p2709_p11 = scmp.lt.s32.totalorder %s48_s15, %s48_s15 }
  0x1c   :  { %p2705_p10 = scmp.ne.s32.totalorder %s48_s15, %s2704_s16  ;;  %p2710_p12 = scmp.lt.s32.totalorder %s2704_s16, %s2704_s16 }
  0x1e   :  { %p2711_p13 = por %p2710_p12, %p2709_p11 }
  0x20   :  { %p2712_p0 = pnand %p2711_p13, %p2705_p10 }
  0x22   :  { %2715 = shalt.err (!%p2712_p0)
}
  0x23   :  { %53 = dma.hbm_to_vmem [thread:$0]  %s3254_s3, 1024, %s48_s15, [#allocation8], %s2722_s8, %s2722_s8, %s2723_s9  }
  0x24   :  { %2716 = dma.done.wait [#allocation6], 1024  }
  0x25   :  { %2717 = vsyncadd [#allocation6], 4294966272 }
  0x26   :  { %2718 = dma.done.wait [#allocation8], 2048  }
  0x27   :  { %2719 = vsyncadd [#allocation8], 4294965248  ;;  %v2725_v1 = vmov 0.0   ;;  %vm2726_vm0 = vmmov 0   ;;  %v73_v2 = vld [vmem:[#allocation7 + $0x18] sm:$0xff]  ;;  %v72_v3 = vld [vmem:[#allocation7 + $0x10] sm:$0xff] }
  0x28   :  { %2315 = vmatprep.subr.mxu1 %v2725_v1  ;;  %2323 = vmatprep.mubr.msk.f32.mxu1 %vm2726_vm0, %v2725_v1  ;;  %v2786_v4 = vld [vmem:[#allocation9 + $0x18] sm:$0xff]  ;;  %v2789_v5 = vld [vmem:[#allocation9 + $0x10] sm:$0xff]  ;;  %v71_v6 = vld [vmem:[#allocation7 + $0x8] sm:$0xff]  ;;  %vm93_vm1 = vcmask 261120   ;;  %v2727_v13 = vmov 0   ;;  %s2729_s20 = smov 32  }
  0x29   :  { %2295 = vmatprep.subr.mxu0 %v73_v2  ;;  %2316 = vmatpush3.msra.mxu1 %v2786_v4  ;;  %v78_v7 = vld [vmem:[#allocation5] sm:$0xff]  ;;  %v2793_v8 = vld [vmem:[#allocation9 + $0x8] sm:$0xff]  ;;  %v2836_v17 = vld [vmem:[%s3255_s4] ss:$0 sm:$0xff]  ;;  %s2730_s24 = smov 96  }
  0x2a   :  { %2296 = vmatpush3.msra.mxu0 %v73_v2  ;;  %2317 = vmatprep.subr.mxu1 %v2725_v1  ;;  %v70_v9 = vld [vmem:[#allocation7] sm:$0xff]  ;;  %v79_v11 = vld [vmem:[#allocation5 + $0x8] sm:$0xff]  ;;  %v80_v54 = vld [vmem:[#allocation5 + $0x10] sm:$0xff] }
  0x2b   :  { %2297 = vmatprep.subr.mxu0 %v72_v3  ;;  %2318 = vmatpush3.msra.mxu1 %v2789_v5  ;;  %v2797_v10 = vld [vmem:[#allocation9] sm:$0xff]  ;;  %v81_v55 = vld [vmem:[#allocation5 + $0x18] sm:$0xff]  ;;  %v83_v57 = vld [vmem:[#allocation5 + $0x28] sm:$0xff] }
  0x2c   :  { %2298 = vmatpush3.msra.mxu0 %v72_v3  ;;  %2319 = vmatprep.subr.mxu1 %v2725_v1  ;;  %v2827_v12 = vld [vmem:[%s3252_s1] sm:$0xff]  ;;  %s2728_s1 = smov 64   ;;  %v84_v58 = vld [vmem:[#allocation5 + $0x30] sm:$0xff] }
  0x2d   :  { %2299 = vmatprep.subr.mxu0 %v71_v6  ;;  %2303 = vmatprep.mubr.msk.f32.mxu0 %vm93_vm1, %v78_v7  ;;  %vm330_vm2 = vcmp.gt.s32.totalorder %v2827_v12, 0  ;;  %vm441_vm4 = vcmp.gt.s32.totalorder %v2827_v12, 1  ;;  %v82_v56 = vld [vmem:[#allocation5 + $0x20] sm:$0xff]  ;;  %v85_v59 = vld [vmem:[#allocation5 + $0x38] sm:$0xff]  ;;  %vm552_vm6 = vcmp.gt.s32.totalorder %v2827_v12, 2  ;;  %vm663_vm8 = vcmp.gt.s32.totalorder %v2827_v12, 3 }
  0x2e   :  { %2300 = vmatpush3.msra.mxu0 %v71_v6  ;;  %2320 = vmatpush3.msra.mxu1 %v2793_v8  ;;  %v331_v14 = vsel %vm330_vm2, 1, %v2727_v13  ;;  %v442_v43 = vsel %vm441_vm4, 1, %v2727_v13  ;;  %vm774_vm10 = vcmp.gt.s32.totalorder %v2827_v12, 4  ;;  %vm885_vm12 = vcmp.gt.s32.totalorder %v2827_v12, 5 }
  0x2f   :  { %2301 = vmatprep.subr.mxu0 %v70_v9  ;;  %2321 = vmatprep.subr.mxu1 %v2725_v1  ;;  %vm996_vm14 = vcmp.gt.s32.totalorder %v2827_v12, 6  ;;  %vm1107_vm2 = vcmp.gt.s32.totalorder %v2827_v12, 7 }
  0x30   :  { %2302 = vmatpush3.msra.mxu0 %v70_v9  ;;  %2322 = vmatpush3.msra.mxu1 %v2797_v10 }
  0x31   :  { %2304 = vmatmul.mubr.msk.f32.vlgmr.msra.gmra.mxu0 %vm93_vm1, %v79_v11  ;;  %2324 = vmatmul.mubr.f32.vlgmr.msra.gmra.mxu1 %v2725_v1 }
  0x32   :  { %2326 = vmatprep.subr.mxu1 %v2725_v1  ;;  %2334 = vmatprep.mubr.msk.f32.mxu1 %vm2726_vm0, %v2725_v1 }
  0x33   :  { %2327 = vmatpush3.msra.mxu1 %v2786_v4  ;;  %2337 = vmatprep.subr.mxu0 %v2725_v1 }
  0x34   :  { %2328 = vmatprep.subr.mxu1 %v2725_v1  ;;  %2338 = vmatpush3.msra.mxu0 %v2786_v4 }
  0x35   :  { %2329 = vmatpush3.msra.mxu1 %v2789_v5  ;;  %2339 = vmatprep.subr.mxu0 %v2725_v1 }
  0x36   :  { %2330 = vmatprep.subr.mxu1 %v2725_v1  ;;  %2340 = vmatpush3.msra.mxu0 %v2789_v5 }
  0x37   :  { %2331 = vmatpush3.msra.mxu1 %v2793_v8  ;;  %2341 = vmatprep.subr.mxu0 %v2725_v1 }
  0x38   :  { %2332 = vmatprep.subr.mxu1 %v2725_v1  ;;  %2342 = vmatpush3.msra.mxu0 %v2793_v8 }
  0x39   :  { %2333 = vmatpush3.msra.mxu1 %v2797_v10  ;;  %2343 = vmatprep.subr.mxu0 %v2725_v1 }
  0x3a   :  { %2344 = vmatpush3.msra.mxu0 %v2797_v10  ;;  %2348 = vmatprep.subr.mxu1 %v2725_v1 }
  0x3b   :  { %2359 = vmatprep.subr.mxu0 %v2725_v1  ;;  %2522 = vset.pattern.permute.xlu1 %v2727_v13 }
  0x3c   :  { %2523 = vset.pattern.permute.xlu0 %v2727_v13  ;;  %333 = vperm.xlu1 %2522, %v331_v14  }
  0x3d   :  { %2306 = vmatprep.mubr.msk.f32.mxu0 %vm93_vm1, %v80_v54 }
  0x3e   :  { %2307 = vmatmul.mubr.msk.f32.gmra.mxu0 %vm93_vm1, %v81_v55 }
  0x3f   :  { %2309 = vmatprep.mubr.msk.f32.mxu0 %vm93_vm1, %v82_v56 }
  0x42   :  { %2310 = vmatmul.mubr.msk.f32.gmra.mxu0 %vm93_vm1, %v83_v57 }
  0x43   :  { %2312 = vmatprep.mubr.msk.f32.mxu0 %vm93_vm1, %v84_v58 }
  0x46   :  { %2313 = vmatmul.mubr.msk.f32.gmra.mxu0 %vm93_vm1, %v85_v59 }
  0x47   :  { %2345 = vmatprep.mubr.msk.f32.mxu0 %vm2726_vm0, %v2725_v1 }
  0xb7   :  { %v2842_v33 = vpop.permute.xlu1 %333 }
  0xb8   :  { %vm335_vm3 = vcmp.eq.s32.totalorder %v2842_v33, 1 }
  0xf1   :  { %v2305_v15 = vpop.f32.mrf.mxu0  ;;  %v301_v16 = vpop.f32.mrf.mxu1 }
  0xf2   :  { %v190_v38 = vadd.f32 %v2305_v15, %v2836_v17 }
  0xf3   :  { %v184_v18 = vpop.f32.mrf.mxu0  ;;  %v2325_v19 = vpop.f32.mrf.mxu1 }
  0xf4   :  { %v185_v20 = vadd.f32 %v2836_v17, %v184_v18 }
  0xf6   :  { %v305_v21 = vadd.f32 %v301_v16, %v185_v20 }
  0xf8   :  { %2524 = vtanh.f32 %v305_v21  ;;  %v2148_v23 = vmul.f32 -1.442695, %v305_v21  ;;  %v553_v21 = vsel %vm552_vm6, 1, %v2727_v13 }
  0xfa   :  { %2526 = vpow2.f32 %v2148_v23 }
  0xfe   :  { %v2308_v3 = vpop.f32.mrf.mxu0 }
 0x100   :  { %v194_v6 = vpop.f32.mrf.mxu0 }
 0x101   :  { %v195_v15 = vadd.f32 %v2836_v17, %v194_v6  ;;  %v775_v6 = vsel %vm774_vm10, 1, %v2727_v13 }
 0x102   :  { %v2897_v7 = vpop.f32.mrf.mxu0 }
 0x104   :  { %v2899_v9 = vpop.f32.mrf.mxu0 }
 0x105   :  { %v2525_v22 = vpop.eup %2524 }
 0x106   :  { %315 = vrot.lane.b32.xlu0 %v2525_v22, %s2728_s1  ;;  %v2901_v11 = vpop.f32.mrf.mxu0 }
 0x107   :  { %v2527_v24 = vpop.eup %2526 }
 0x108   :  { %v309_v25 = vadd.f32 1.0, %v2527_v24  ;;  %v2903_v14 = vpop.f32.mrf.mxu0 }
 0x10a   :  { %2528 = vrcp.f32 %v309_v25 }
 0x117   :  { %v2529_v26 = vpop.eup %2528 }
 0x118   :  { %v313_v29 = vmul.f32 0.0, %v2529_v26 }
 0x178   :  { %v316_v27 = vpop.permute.xlu0 %315 }
 0x179   :  { %v318_v28 = vmul.f32 %v2529_v26, %v316_v27 }
 0x17b   :  { %320 = vrot.lane.b32.xlu0 %v318_v28, %s2729_s20 }
 0x1ed   :  { %v321_v30 = vpop.permute.xlu0 %320 }
 0x1ee   :  { %v323_v31 = vadd.f32 %v321_v30, %v313_v29 }
 0x1f0   :  { %2530 = vtanh.f32 %v323_v31  ;;  %v2867_v50 = vsel %vm335_vm3, %v323_v31, 0.0 }
 0x1fd   :  { %v2531_v32 = vpop.eup %2530 }
 0x1fe   :  { %326 = vrot.lane.b32.xlu1 %v2531_v32, %s2728_s1 }
 0x270   :  { %v327_v34 = vpop.permute.xlu1 %326 }
 0x271   :  { %v329_v35 = vmul.f32 %v2529_v26, %v327_v34 }
 0x273   :  { %v336_v36 = vsel %vm335_vm3, %v329_v35, 0.0 }
 0x274   :  { %339 = vrot.lane.b32.xlu0 %v336_v36, %s2729_s20 }
 0x2e6   :  { %v340_v37 = vpop.permute.xlu0 %339 }
 0x2e7   :  { %342 = vst.msk [vmem:[#allocation2] sm:$0xff] %vm93_vm1, %v340_v37  ;;  %2335 = vmatmul.mubr.msk.f32.vlgmr.msra.gmra.mxu1 %vm93_vm1, %v340_v37 }
 0x2e8   :  { %2349 = vmatpush3.msra.mxu1 %v2786_v4  ;;  %2356 = vmatprep.mubr.msk.f32.mxu1 %vm2726_vm0, %v2725_v1 }
 0x2e9   :  { %2350 = vmatprep.subr.mxu1 %v2725_v1 }
 0x2ea   :  { %2351 = vmatpush3.msra.mxu1 %v2789_v5 }
 0x2eb   :  { %2352 = vmatprep.subr.mxu1 %v2725_v1 }
 0x2ec   :  { %2353 = vmatpush3.msra.mxu1 %v2793_v8 }
 0x2ed   :  { %2354 = vmatprep.subr.mxu1 %v2725_v1 }
 0x2ee   :  { %2355 = vmatpush3.msra.mxu1 %v2797_v10 }
 0x2ef   :  { %2370 = vmatprep.subr.mxu1 %v2725_v1 }
 0x3a7   :  { %v412_v39 = vpop.f32.mrf.mxu1 }
 0x3a8   :  { %v416_v40 = vadd.f32 %v412_v39, %v190_v38  ;;  %v200_v39 = vadd.f32 %v2308_v3, %v2836_v17 }
 0x3a9   :  { %v2336_v41 = vpop.f32.mrf.mxu1 }
 0x3aa   :  { %2532 = vtanh.f32 %v416_v40  ;;  %v2150_v44 = vmul.f32 -1.442695, %v416_v40 }
 0x3ac   :  { %2534 = vpow2.f32 %v2150_v44  ;;  %v664_v44 = vsel %vm663_vm8, 1, %v2727_v13 }
 0x3b7   :  { %v2533_v42 = vpop.eup %2532 }
 0x3b8   :  { %426 = vrot.lane.b32.xlu1 %v2533_v42, %s2728_s1 }
 0x3b9   :  { %v2535_v45 = vpop.eup %2534 }
 0x3ba   :  { %v420_v46 = vadd.f32 1.0, %v2535_v45 }
 0x3bc   :  { %444 = vperm.xlu1 %2522, %v442_v43   ;;  %2536 = vrcp.f32 %v420_v46 }
 0x3c9   :  { %v2537_v47 = vpop.eup %2536 }
 0x3ca   :  { %v424_v51 = vmul.f32 %v2537_v47, %v2867_v50 }
 0x42a   :  { %v427_v48 = vpop.permute.xlu1 %426 }
 0x42b   :  { %v429_v49 = vmul.f32 %v2537_v47, %v427_v48 }
 0x42d   :  { %431 = vrot.lane.b32.xlu0 %v429_v49, %s2729_s20 }
 0x437   :  { %v2879_v61 = vpop.permute.xlu1 %444 }
 0x438   :  { %vm446_vm5 = vcmp.eq.s32.totalorder %v2879_v61, 1 }
 0x49f   :  { %v432_v52 = vpop.permute.xlu0 %431 }
 0x4a0   :  { %v434_v53 = vadd.f32 %v432_v52, %v424_v51 }
 0x4a2   :  { %2538 = vtanh.f32 %v434_v53  ;;  %v448_v28 = vsel %vm446_vm5, %v434_v53, %v2867_v50 }
 0x4af   :  { %v2539_v60 = vpop.eup %2538 }
 0x4b0   :  { %437 = vrot.lane.b32.xlu0 %v2539_v60, %s2728_s1 }
 0x522   :  { %v438_v62 = vpop.permute.xlu0 %437 }
 0x523   :  { %v440_v63 = vmul.f32 %v2537_v47, %v438_v62  ;;  %v205_v62 = vadd.f32 %v2836_v17, %v2899_v9 }
 0x525   :  { %v447_v0 = vsel %vm446_vm5, %v440_v63, %v336_v36 }
 0x526   :  { %450 = vrot.lane.b32.xlu1 %v447_v0, %s2729_s20 }
 0x598   :  { %v451_v2 = vpop.permute.xlu1 %450 }
 0x599   :  { %453 = vst.msk [vmem:[#allocation2 + $0x8] sm:$0xff] %vm93_vm1, %v451_v2  ;;  %2346 = vmatmul.mubr.msk.f32.vlgmr.msra.gmra.mxu0 %vm93_vm1, %v451_v2 }
 0x59a   :  { %2360 = vmatpush3.msra.mxu0 %v2786_v4  ;;  %2367 = vmatprep.mubr.msk.f32.mxu0 %vm2726_vm0, %v2725_v1 }
 0x59b   :  { %2361 = vmatprep.subr.mxu0 %v2725_v1 }
 0x59c   :  { %2362 = vmatpush3.msra.mxu0 %v2789_v5 }
 0x59d   :  { %2363 = vmatprep.subr.mxu0 %v2725_v1 }
 0x59e   :  { %2364 = vmatpush3.msra.mxu0 %v2793_v8 }
 0x59f   :  { %2365 = vmatprep.subr.mxu0 %v2725_v1 }
 0x5a0   :  { %2366 = vmatpush3.msra.mxu0 %v2797_v10 }
 0x5a1   :  { %2381 = vmatprep.subr.mxu0 %v2725_v1 }
 0x659   :  { %v523_v16 = vpop.f32.mrf.mxu0 }
 0x65a   :  { %v527_v18 = vadd.f32 %v523_v16, %v195_v15 }
 0x65b   :  { %v2347_v19 = vpop.f32.mrf.mxu0 }
 0x65c   :  { %2540 = vtanh.f32 %v527_v18  ;;  %v2152_v22 = vmul.f32 -1.442695, %v527_v18 }
 0x65e   :  { %2542 = vpow2.f32 %v2152_v22 }
 0x669   :  { %v2541_v20 = vpop.eup %2540 }
 0x66a   :  { %537 = vrot.lane.b32.xlu0 %v2541_v20, %s2728_s1 }
 0x66b   :  { %v2543_v23 = vpop.eup %2542 }
 0x66c   :  { %v531_v24 = vadd.f32 1.0, %v2543_v23 }
 0x66e   :  { %555 = vperm.xlu0 %2523, %v553_v21   ;;  %2544 = vrcp.f32 %v531_v24 }
 0x67b   :  { %v2545_v25 = vpop.eup %2544 }
 0x67c   :  { %v535_v29 = vmul.f32 %v2545_v25, %v448_v28 }
 0x6dc   :  { %v538_v26 = vpop.permute.xlu0 %537 }
 0x6dd   :  { %v540_v27 = vmul.f32 %v2545_v25, %v538_v26 }
 0x6df   :  { %542 = vrot.lane.b32.xlu1 %v540_v27, %s2729_s20 }
 0x6e9   :  { %v2914_v34 = vpop.permute.xlu0 %555 }
 0x6ea   :  { %vm557_vm7 = vcmp.eq.s32.totalorder %v2914_v34, 1 }
 0x751   :  { %v543_v30 = vpop.permute.xlu1 %542 }
 0x752   :  { %v545_v31 = vadd.f32 %v543_v30, %v535_v29 }
 0x754   :  { %2546 = vtanh.f32 %v545_v31  ;;  %v559_v51 = vsel %vm557_vm7, %v545_v31, %v448_v28 }
 0x761   :  { %v2547_v32 = vpop.eup %2546 }
 0x762   :  { %548 = vrot.lane.b32.xlu1 %v2547_v32, %s2728_s1 }
 0x7d4   :  { %v549_v35 = vpop.permute.xlu1 %548 }
 0x7d5   :  { %v551_v36 = vmul.f32 %v2545_v25, %v549_v35 }
 0x7d7   :  { %v558_v37 = vsel %vm557_vm7, %v551_v36, %v447_v0 }
 0x7d8   :  { %561 = vrot.lane.b32.xlu1 %v558_v37, %s2729_s20 }
 0x84a   :  { %v562_v38 = vpop.permute.xlu1 %561 }
 0x84b   :  { %564 = vst.msk [vmem:[#allocation2 + $0x10] sm:$0xff] %vm93_vm1, %v562_v38  ;;  %2357 = vmatmul.mubr.msk.f32.vlgmr.msra.gmra.mxu1 %vm93_vm1, %v562_v38 }
 0x84c   :  { %2371 = vmatpush3.msra.mxu1 %v2786_v4  ;;  %2378 = vmatprep.mubr.msk.f32.mxu1 %vm2726_vm0, %v2725_v1 }
 0x84d   :  { %2372 = vmatprep.subr.mxu1 %v2725_v1 }
 0x84e   :  { %2373 = vmatpush3.msra.mxu1 %v2789_v5 }
 0x84f   :  { %2374 = vmatprep.subr.mxu1 %v2725_v1 }
 0x850   :  { %2375 = vmatpush3.msra.mxu1 %v2793_v8 }
 0x851   :  { %2376 = vmatprep.subr.mxu1 %v2725_v1 }
 0x852   :  { %2377 = vmatpush3.msra.mxu1 %v2797_v10 }
 0x853   :  { %2392 = vmatprep.subr.mxu1 %v2725_v1 }
 0x90b   :  { %v634_v40 = vpop.f32.mrf.mxu1 }
 0x90c   :  { %v638_v41 = vadd.f32 %v634_v40, %v200_v39 }
 0x90d   :  { %v2358_v42 = vpop.f32.mrf.mxu1 }
 0x90e   :  { %2548 = vtanh.f32 %v638_v41  ;;  %v2154_v45 = vmul.f32 -1.442695, %v638_v41 }
 0x910   :  { %2550 = vpow2.f32 %v2154_v45 }
 0x91b   :  { %v2549_v43 = vpop.eup %2548 }
 0x91c   :  { %648 = vrot.lane.b32.xlu0 %v2549_v43, %s2728_s1 }
 0x91d   :  { %v2551_v46 = vpop.eup %2550 }
 0x91e   :  { %v642_v47 = vadd.f32 1.0, %v2551_v46 }
 0x920   :  { %666 = vperm.xlu0 %2523, %v664_v44   ;;  %2552 = vrcp.f32 %v642_v47  ;;  %v1123_v44 = vld [vmem:[#allocation7 + $0x38] sm:$0xff] }
 0x92d   :  { %v2553_v48 = vpop.eup %2552 }
 0x92e   :  { %v646_v52 = vmul.f32 %v2553_v48, %v559_v51 }
 0x98e   :  { %v649_v49 = vpop.permute.xlu0 %648 }
 0x98f   :  { %v651_v50 = vmul.f32 %v2553_v48, %v649_v49 }
 0x991   :  { %653 = vrot.lane.b32.xlu1 %v651_v50, %s2729_s20 }
 0x99b   :  { %v2940_v56 = vpop.permute.xlu0 %666 }
 0x99c   :  { %vm668_vm9 = vcmp.eq.s32.totalorder %v2940_v56, 1 }
 0xa03   :  { %v654_v53 = vpop.permute.xlu1 %653 }
 0xa04   :  { %v656_v54 = vadd.f32 %v654_v53, %v646_v52  ;;  %v1129_v52 = vld [vmem:[#allocation2] sm:$0xff]  ;;  %v1121_v53 = vld [vmem:[#allocation7 + $0x28] sm:$0xff] }
 0xa06   :  { %2554 = vtanh.f32 %v656_v54  ;;  %v670_v21 = vsel %vm668_vm9, %v656_v54, %v559_v51  ;;  %v1122_v51 = vld [vmem:[#allocation7 + $0x30] sm:$0xff]  ;;  %v1120_v54 = vld [vmem:[#allocation7 + $0x20] sm:$0xff] }
 0xa13   :  { %v2555_v55 = vpop.eup %2554 }
 0xa14   :  { %659 = vrot.lane.b32.xlu1 %v2555_v55, %s2728_s1  ;;  %v1130_v55 = vld [vmem:[#allocation2 + $0x8] sm:$0xff] }
 0xa86   :  { %v660_v57 = vpop.permute.xlu1 %659 }
 0xa87   :  { %v662_v58 = vmul.f32 %v2553_v48, %v660_v57  ;;  %v1131_v57 = vld [vmem:[#allocation2 + $0x10] sm:$0xff] }
 0xa89   :  { %v669_v59 = vsel %vm668_vm9, %v662_v58, %v558_v37 }
 0xa8a   :  { %672 = vrot.lane.b32.xlu0 %v669_v59, %s2729_s20 }
 0xafc   :  { %v673_v60 = vpop.permute.xlu0 %672 }
 0xafd   :  { %675 = vst.msk [vmem:[#allocation2 + $0x18] sm:$0xff] %vm93_vm1, %v673_v60  ;;  %2368 = vmatmul.mubr.msk.f32.vlgmr.msra.gmra.mxu0 %vm93_vm1, %v673_v60 }
 0xafe   :  { %2382 = vmatpush3.msra.mxu0 %v2786_v4  ;;  %2389 = vmatprep.mubr.msk.f32.mxu0 %vm2726_vm0, %v2725_v1 }
 0xaff   :  { %2383 = vmatprep.subr.mxu0 %v2725_v1 }
 0xb00   :  { %2384 = vmatpush3.msra.mxu0 %v2789_v5 }
 0xb01   :  { %2385 = vmatprep.subr.mxu0 %v2725_v1 }
 0xb02   :  { %2386 = vmatpush3.msra.mxu0 %v2793_v8 }
 0xb03   :  { %2387 = vmatprep.subr.mxu0 %v2725_v1 }
 0xb04   :  { %2388 = vmatpush3.msra.mxu0 %v2797_v10  ;;  %v1132_v58 = vld [vmem:[#allocation2 + $0x18] sm:$0xff] }
 0xb05   :  { %2403 = vmatprep.subr.mxu0 %v1123_v44 }
 0xbbd   :  { %v745_v63 = vpop.f32.mrf.mxu0 }
 0xbbe   :  { %v749_v0 = vadd.f32 %v745_v63, %v205_v62  ;;  %v215_v62 = vadd.f32 %v2836_v17, %v2903_v14 }
 0xbbf   :  { %v2369_v2 = vpop.f32.mrf.mxu0 }
 0xbc0   :  { %2556 = vtanh.f32 %v749_v0  ;;  %v2156_v15 = vmul.f32 -1.442695, %v749_v0 }
 0xbc2   :  { %2558 = vpow2.f32 %v2156_v15 }
 0xbcd   :  { %v2557_v3 = vpop.eup %2556 }
 0xbce   :  { %759 = vrot.lane.b32.xlu1 %v2557_v3, %s2728_s1 }
 0xbcf   :  { %v2559_v16 = vpop.eup %2558 }
 0xbd0   :  { %v753_v18 = vadd.f32 1.0, %v2559_v16 }
 0xbd2   :  { %777 = vperm.xlu1 %2522, %v775_v6   ;;  %2560 = vrcp.f32 %v753_v18  ;;  %v997_v6 = vsel %vm996_vm14, 1, %v2727_v13 }
 0xbdf   :  { %v2561_v19 = vpop.eup %2560 }
 0xbe0   :  { %v757_v22 = vmul.f32 %v2561_v19, %v670_v21 }
 0xc40   :  { %v760_v20 = vpop.permute.xlu1 %759 }
 0xc41   :  { %v762_v9 = vmul.f32 %v2561_v19, %v760_v20 }
 0xc43   :  { %764 = vrot.lane.b32.xlu0 %v762_v9, %s2729_s20 }
 0xc4d   :  { %v2966_v26 = vpop.permute.xlu1 %777 }
 0xc4e   :  { %vm779_vm11 = vcmp.eq.s32.totalorder %v2966_v26, 1 }
 0xcb5   :  { %v765_v23 = vpop.permute.xlu0 %764 }
 0xcb6   :  { %v767_v24 = vadd.f32 %v765_v23, %v757_v22 }
 0xcb8   :  { %2562 = vtanh.f32 %v767_v24  ;;  %v781_v40 = vsel %vm779_vm11, %v767_v24, %v670_v21 }
 0xcc5   :  { %v2563_v25 = vpop.eup %2562 }
 0xcc6   :  { %770 = vrot.lane.b32.xlu0 %v2563_v25, %s2728_s1  ;;  %v3026_v25 = vld [vmem:[#allocation9 + $0x38] sm:$0xff] }
 0xd38   :  { %v771_v27 = vpop.permute.xlu0 %770 }
 0xd39   :  { %v773_v28 = vmul.f32 %v2561_v19, %v771_v27  ;;  %v3029_v27 = vld [vmem:[#allocation9 + $0x30] sm:$0xff] }
 0xd3b   :  { %v780_v29 = vsel %vm779_vm11, %v773_v28, %v669_v59  ;;  %v3033_v28 = vld [vmem:[#allocation9 + $0x28] sm:$0xff] }
 0xd3c   :  { %783 = vrot.lane.b32.xlu1 %v780_v29, %s2729_s20 }
 0xdae   :  { %v784_v30 = vpop.permute.xlu1 %783 }
 0xdaf   :  { %786 = vst.msk [vmem:[#allocation2 + $0x20] sm:$0xff] %vm93_vm1, %v784_v30  ;;  %2379 = vmatmul.mubr.msk.f32.vlgmr.msra.gmra.mxu1 %vm93_vm1, %v784_v30 }
 0xdb0   :  { %2393 = vmatpush3.msra.mxu1 %v2786_v4  ;;  %2400 = vmatprep.mubr.msk.f32.mxu1 %vm2726_vm0, %v2725_v1  ;;  %v210_v4 = vadd.f32 %v2897_v7, %v2836_v17 }
 0xdb1   :  { %2394 = vmatprep.subr.mxu1 %v2725_v1 }
 0xdb2   :  { %2395 = vmatpush3.msra.mxu1 %v2789_v5 }
 0xdb3   :  { %2396 = vmatprep.subr.mxu1 %v2725_v1 }
 0xdb4   :  { %2397 = vmatpush3.msra.mxu1 %v2793_v8  ;;  %v886_v8 = vsel %vm885_vm12, 1, %v2727_v13 }
 0xdb5   :  { %2398 = vmatprep.subr.mxu1 %v2725_v1 }
 0xdb6   :  { %2399 = vmatpush3.msra.mxu1 %v2797_v10  ;;  %v1133_v59 = vld [vmem:[#allocation2 + $0x20] sm:$0xff] }
 0xdb7   :  { %2423 = vmatprep.subr.mxu1 %v2725_v1 }
 0xe6f   :  { %v856_v31 = vpop.f32.mrf.mxu1 }
 0xe70   :  { %v860_v32 = vadd.f32 %v856_v31, %v210_v4 }
 0xe71   :  { %v2380_v35 = vpop.f32.mrf.mxu1 }
 0xe72   :  { %2564 = vtanh.f32 %v860_v32  ;;  %v2158_v36 = vmul.f32 -1.442695, %v860_v32 }
 0xe74   :  { %2566 = vpow2.f32 %v2158_v36 }
 0xe7f   :  { %v2565_v5 = vpop.eup %2564 }
 0xe80   :  { %870 = vrot.lane.b32.xlu0 %v2565_v5, %s2728_s1 }
 0xe81   :  { %v2567_v10 = vpop.eup %2566 }
 0xe82   :  { %v864_v37 = vadd.f32 1.0, %v2567_v10 }
 0xe84   :  { %888 = vperm.xlu0 %2523, %v886_v8   ;;  %2568 = vrcp.f32 %v864_v37  ;;  %v220_v8 = vadd.f32 %v2901_v11, %v2836_v17 }
 0xe91   :  { %v2569_v38 = vpop.eup %2568 }
 0xe92   :  { %v868_v41 = vmul.f32 %v2569_v38, %v781_v40 }
 0xef2   :  { %v871_v39 = vpop.permute.xlu0 %870 }
 0xef3   :  { %v873_v7 = vmul.f32 %v2569_v38, %v871_v39 }
 0xef5   :  { %875 = vrot.lane.b32.xlu1 %v873_v7, %s2729_s20  ;;  %v3081_v7 = vld [vmem:[%s3255_s4 + $0x1] ss:$0 sm:$0xff] }
 0xeff   :  { %v2993_v46 = vpop.permute.xlu0 %888 }
 0xf00   :  { %vm890_vm13 = vcmp.eq.s32.totalorder %v2993_v46, 1 }
 0xf67   :  { %v876_v42 = vpop.permute.xlu1 %875 }
 0xf68   :  { %v878_v43 = vadd.f32 %v876_v42, %v868_v41 }
 0xf6a   :  { %2570 = vtanh.f32 %v878_v43  ;;  %v3019_v9 = vsel %vm890_vm13, %v878_v43, %v781_v40 }
 0xf77   :  { %v2571_v45 = vpop.eup %2570 }
 0xf78   :  { %881 = vrot.lane.b32.xlu1 %v2571_v45, %s2728_s1 }
 0xfea   :  { %v882_v47 = vpop.permute.xlu1 %881 }
 0xfeb   :  { %v884_v48 = vmul.f32 %v2569_v38, %v882_v47 }
 0xfed   :  { %v2998_v49 = vsel %vm890_vm13, %v884_v48, %v780_v29  ;;  %v3037_v29 = vld [vmem:[#allocation9 + $0x20] sm:$0xff] }
 0xfee   :  { %894 = vrot.lane.b32.xlu0 %v2998_v49, %s2729_s20 }
0x1060   :  { %v895_v50 = vpop.permute.xlu0 %894 }
0x1061   :  { %897 = vst.msk [vmem:[#allocation2 + $0x28] sm:$0xff] %vm93_vm1, %v895_v50  ;;  %2390 = vmatmul.mubr.msk.f32.vlgmr.msra.gmra.mxu0 %vm93_vm1, %v895_v50 }
0x1062   :  { %2404 = vmatpush3.msra.mxu0 %v1123_v44  ;;  %2411 = vmatprep.mubr.msk.f32.mxu0 %vm93_vm1, %v1129_v52 }
0x1063   :  { %2405 = vmatprep.subr.mxu0 %v1122_v51 }
0x1064   :  { %2406 = vmatpush3.msra.mxu0 %v1122_v51 }
0x1065   :  { %2407 = vmatprep.subr.mxu0 %v1121_v53 }
0x1066   :  { %2408 = vmatpush3.msra.mxu0 %v1121_v53 }
0x1067   :  { %2409 = vmatprep.subr.mxu0 %v1120_v54 }
0x1068   :  { %2410 = vmatpush3.msra.mxu0 %v1120_v54  ;;  %v1134_v60 = vld [vmem:[#allocation2 + $0x28] sm:$0xff] }
0x1069   :  { %2412 = vmatmul.mubr.msk.f32.vlgmr.msra.gmra.mxu0 %vm93_vm1, %v1130_v55  ;;  %2445 = vmatprep.subr.mxu0 %v2725_v1 }
0x106a   :  { %2414 = vmatprep.mubr.msk.f32.mxu0 %vm93_vm1, %v1131_v57  ;;  %2446 = vmatpush3.msra.mxu0 %v3026_v25 }
0x106b   :  { %2447 = vmatprep.subr.mxu0 %v2725_v1 }
0x106c   :  { %2448 = vmatpush3.msra.mxu0 %v3029_v27 }
0x106d   :  { %2415 = vmatmul.mubr.msk.f32.gmra.mxu0 %vm93_vm1, %v1132_v58  ;;  %2449 = vmatprep.subr.mxu0 %v2725_v1 }
0x106e   :  { %2417 = vmatprep.mubr.msk.f32.mxu0 %vm93_vm1, %v1133_v59  ;;  %2450 = vmatpush3.msra.mxu0 %v3033_v28 }
0x106f   :  { %2451 = vmatprep.subr.mxu0 %v2725_v1 }
0x1070   :  { %2452 = vmatpush3.msra.mxu0 %v3037_v29 }
0x1071   :  { %2418 = vmatmul.mubr.msk.f32.gmra.mxu0 %vm93_vm1, %v1134_v60  ;;  %2467 = vmatprep.subr.mxu0 %v2725_v1 }
0x1121   :  { %v967_v63 = vpop.f32.mrf.mxu0 }
0x1122   :  { %v971_v0 = vadd.f32 %v967_v63, %v215_v62 }
0x1123   :  { %v2391_v2 = vpop.f32.mrf.mxu0 }
0x1124   :  { %2572 = vtanh.f32 %v971_v0  ;;  %v2160_v15 = vmul.f32 -1.442695, %v971_v0 }
0x1126   :  { %2574 = vpow2.f32 %v2160_v15 }
0x1129   :  { %v2413_v36 = vpop.f32.mrf.mxu0 }
0x112a   :  { %v1241_v12 = vadd.f32 %v2413_v36, %v3081_v7 }
0x112b   :  { %v1235_v39 = vpop.f32.mrf.mxu0 }
0x112c   :  { %v1236_v40 = vadd.f32 %v3081_v7, %v1235_v39 }
0x1131   :  { %v2573_v3 = vpop.eup %2572 }
0x1132   :  { %981 = vrot.lane.b32.xlu1 %v2573_v3, %s2728_s1  ;;  %v1108_v3 = vsel %vm1107_vm2, 1, %v2727_v13 }
0x1133   :  { %v2575_v16 = vpop.eup %2574 }
0x1134   :  { %v975_v18 = vadd.f32 1.0, %v2575_v16 }
0x1136   :  { %999 = vperm.xlu1 %2522, %v997_v6   ;;  %2576 = vrcp.f32 %v975_v18 }
0x1143   :  { %v2577_v19 = vpop.eup %2576 }
0x1144   :  { %v979_v21 = vmul.f32 %v2577_v19, %v3019_v9 }
0x11a4   :  { %v982_v20 = vpop.permute.xlu1 %981 }
0x11a5   :  { %v984_v14 = vmul.f32 %v2577_v19, %v982_v20 }
0x11a7   :  { %986 = vrot.lane.b32.xlu0 %v984_v14, %s2729_s20 }
0x11b1   :  { %v3041_v30 = vpop.permute.xlu1 %999 }
0x11b2   :  { %vm1001_vm15 = vcmp.eq.s32.totalorder %v3041_v30, 1 }
0x1219   :  { %v987_v22 = vpop.permute.xlu0 %986 }
0x121a   :  { %v3022_v23 = vadd.f32 %v987_v22, %v979_v21 }
0x121c   :  { %2578 = vtanh.f32 %v3022_v23  ;;  %v1003_v21 = vsel %vm1001_vm15, %v3022_v23, %v3019_v9 }
0x1229   :  { %v2579_v24 = vpop.eup %2578 }
0x122a   :  { %992 = vrot.lane.b32.xlu0 %v2579_v24, %s2728_s1 }
0x129c   :  { %v993_v4 = vpop.permute.xlu0 %992 }
0x129d   :  { %v995_v31 = vmul.f32 %v2577_v19, %v993_v4 }
0x129f   :  { %v3048_v32 = vsel %vm1001_vm15, %v995_v31, %v2998_v49 }
0x12a0   :  { %1005 = vrot.lane.b32.xlu1 %v3048_v32, %s2729_s20 }
0x1312   :  { %v1006_v35 = vpop.permute.xlu1 %1005 }
0x1313   :  { %1008 = vst.msk [vmem:[#allocation2 + $0x30] sm:$0xff] %vm93_vm1, %v1006_v35  ;;  %2401 = vmatmul.mubr.msk.f32.vlgmr.msra.gmra.mxu1 %vm93_vm1, %v1006_v35 }
0x1314   :  { %2424 = vmatpush3.msra.mxu1 %v3026_v25  ;;  %2431 = vmatprep.mubr.msk.f32.mxu1 %vm2726_vm0, %v2725_v1 }
0x1315   :  { %2425 = vmatprep.subr.mxu1 %v2725_v1 }
0x1316   :  { %2426 = vmatpush3.msra.mxu1 %v3029_v27 }
0x1317   :  { %2427 = vmatprep.subr.mxu1 %v2725_v1 }
0x1318   :  { %2428 = vmatpush3.msra.mxu1 %v3033_v28 }
0x1319   :  { %2429 = vmatprep.subr.mxu1 %v2725_v1 }
0x131a   :  { %2430 = vmatpush3.msra.mxu1 %v3037_v29  ;;  %v1135_v5 = vld [vmem:[#allocation2 + $0x30] sm:$0xff] }
0x131b   :  { %2432 = vmatmul.mubr.f32.vlgmr.msra.gmra.mxu1 %v2725_v1  ;;  %2420 = vmatprep.mubr.msk.f32.mxu0 %vm93_vm1, %v1135_v5 }
0x131c   :  { %2434 = vmatprep.subr.mxu1 %v2725_v1  ;;  %2442 = vmatprep.mubr.msk.f32.mxu1 %vm2726_vm0, %v2725_v1 }
0x131d   :  { %2435 = vmatpush3.msra.mxu1 %v3026_v25 }
0x131e   :  { %2436 = vmatprep.subr.mxu1 %v2725_v1 }
0x131f   :  { %2437 = vmatpush3.msra.mxu1 %v3029_v27 }
0x1320   :  { %2438 = vmatprep.subr.mxu1 %v2725_v1 }
0x1321   :  { %2439 = vmatpush3.msra.mxu1 %v3033_v28 }
0x1322   :  { %2440 = vmatprep.subr.mxu1 %v2725_v1 }
0x1323   :  { %2441 = vmatpush3.msra.mxu1 %v3037_v29 }
0x1324   :  { %2456 = vmatprep.subr.mxu1 %v2725_v1 }
0x13d3   :  { %v1078_v10 = vpop.f32.mrf.mxu1 }
0x13d4   :  { %v1082_v37 = vadd.f32 %v1078_v10, %v220_v8 }
0x13d5   :  { %v2402_v38 = vpop.f32.mrf.mxu1 }
0x13d6   :  { %v2162_v55 = vmul.f32 -1.442695, %v1082_v37 }
0x13db   :  { %v1349_v41 = vpop.f32.mrf.mxu1 }
0x13dc   :  { %v1353_v42 = vadd.f32 %v1349_v41, %v1236_v40 }
0x13dd   :  { %v2433_v43 = vpop.f32.mrf.mxu1 }
0x13de   :  { %2580 = vtanh.f32 %v1353_v42  ;;  %v2173_v17 = vmul.f32 -1.442695, %v1353_v42 }
0x13e0   :  { %2582 = vpow2.f32 %v2173_v17 }
0x13eb   :  { %v2581_v44 = vpop.eup %2580 }
0x13ec   :  { %1363 = vrot.lane.b32.xlu0 %v2581_v44, %s2728_s1 }
0x13ed   :  { %v2583_v11 = vpop.eup %2582 }
0x13ee   :  { %v1357_v45 = vadd.f32 1.0, %v2583_v11  ;;  %v2416_v11 = vpop.f32.mrf.mxu0 }
0x13ef   :  { %v1251_v61 = vadd.f32 %v2416_v11, %v3081_v7 }
0x13f0   :  { %2584 = vrcp.f32 %v1357_v45  ;;  %v1245_v45 = vpop.f32.mrf.mxu0 }
0x13fd   :  { %v2585_v47 = vpop.eup %2584 }
0x13fe   :  { %v1361_v50 = vmul.f32 0.0, %v2585_v47 }
0x145e   :  { %v1364_v48 = vpop.permute.xlu0 %1363 }
0x145f   :  { %v1366_v49 = vmul.f32 %v2585_v47, %v1364_v48 }
0x1461   :  { %1368 = vrot.lane.b32.xlu1 %v1366_v49, %s2729_s20 }
0x14d3   :  { %v1369_v51 = vpop.permute.xlu1 %1368 }
0x14d4   :  { %v1371_v52 = vadd.f32 %v1369_v51, %v1361_v50  ;;  %v1246_v51 = vadd.f32 %v3081_v7, %v1245_v45 }
0x14d6   :  { %2586 = vtanh.f32 %v1371_v52  ;;  %v1379_v36 = vsel %vm335_vm3, %v1371_v52, 0.0 }
0x14d7   :  { %2588 = vtanh.f32 %v1082_v37 }
0x14d8   :  { %2590 = vpow2.f32 %v2162_v55 }
0x14e3   :  { %v2587_v53 = vpop.eup %2586 }
0x14e4   :  { %1374 = vrot.lane.b32.xlu0 %v2587_v53, %s2728_s1  ;;  %v2589_v54 = vpop.eup %2588 }
0x14e5   :  { %v2591_v57 = vpop.eup %2590 }
0x14e6   :  { %v1086_v58 = vadd.f32 1.0, %v2591_v57 }
0x14e8   :  { %1092 = vrot.lane.b32.xlu0 %v2589_v54, %s2728_s1  ;;  %2592 = vrcp.f32 %v1086_v58 }
0x14f5   :  { %v2593_v63 = vpop.eup %2592 }
0x14f6   :  { %v1090_v24 = vmul.f32 %v2593_v63, %v1003_v21 }
0x1556   :  { %v1375_v59 = vpop.permute.xlu0 %1374 }
0x1557   :  { %v1377_v60 = vmul.f32 %v2585_v47, %v1375_v59  ;;  %v3145_v47 = vpop.f32.mrf.mxu0 }
0x1558   :  { %v1261_v56 = vadd.f32 %v3145_v47, %v3081_v7 }
0x1559   :  { %v3090_v62 = vsel %vm335_vm3, %v1377_v60, 0.0  ;;  %v3147_v48 = vpop.f32.mrf.mxu0 }
0x155a   :  { %1382 = vrot.lane.b32.xlu1 %v3090_v62, %s2729_s20  ;;  %v1093_v0 = vpop.permute.xlu0 %1092  ;;  %v1256_v34 = vadd.f32 %v3081_v7, %v3147_v48 }
0x155b   :  { %v1095_v2 = vmul.f32 %v2593_v63, %v1093_v0 }
0x155d   :  { %1097 = vrot.lane.b32.xlu0 %v1095_v2, %s2729_s20 }
0x1561   :  { %1110 = vperm.xlu0 %2523, %v1108_v3  }
0x15cc   :  { %v1383_v6 = vpop.permute.xlu1 %1382 }
0x15cd   :  { %2443 = vmatmul.mubr.msk.f32.vlgmr.msra.gmra.mxu1 %vm93_vm1, %v1383_v6 }
0x15ce   :  { %2457 = vmatpush3.msra.mxu1 %v3026_v25  ;;  %2464 = vmatprep.mubr.msk.f32.mxu1 %vm2726_vm0, %v2725_v1 }
0x15cf   :  { %2458 = vmatprep.subr.mxu1 %v2725_v1  ;;  %v1098_v22 = vpop.permute.xlu0 %1097 }
0x15d0   :  { %2459 = vmatpush3.msra.mxu1 %v3029_v27  ;;  %v1100_v4 = vadd.f32 %v1098_v22, %v1090_v24 }
0x15d1   :  { %2460 = vmatprep.subr.mxu1 %v2725_v1 }
0x15d2   :  { %2461 = vmatpush3.msra.mxu1 %v3033_v28 }
0x15d3   :  { %2462 = vmatprep.subr.mxu1 %v2725_v1 }
0x15d4   :  { %2463 = vmatpush3.msra.mxu1 %v3037_v29 }
0x15d5   :  { %2478 = vmatprep.subr.mxu1 %v2725_v1 }
0x15dc   :  { %v3118_v9 = vpop.permute.xlu0 %1110 }
0x15dd   :  { %vm1112_vm4 = vcmp.eq.s32.totalorder %v3118_v9, 1 }
0x168d   :  { %v1452_v13 = vpop.f32.mrf.mxu1 }
0x168e   :  { %v1456_v15 = vadd.f32 %v1452_v13, %v1241_v12 }
0x168f   :  { %v2444_v16 = vpop.f32.mrf.mxu1 }
0x1690   :  { %2594 = vtanh.f32 %v1456_v15  ;;  %v2175_v19 = vmul.f32 -1.442695, %v1456_v15 }
0x1692   :  { %2596 = vpow2.f32 %v2175_v19 }
0x169d   :  { %v2595_v18 = vpop.eup %2594 }
0x169e   :  { %1466 = vrot.lane.b32.xlu1 %v2595_v18, %s2728_s1 }
0x169f   :  { %v2597_v20 = vpop.eup %2596 }
0x16a0   :  { %v1460_v14 = vadd.f32 1.0, %v2597_v20 }
0x16a2   :  { %2598 = vrcp.f32 %v1460_v14 }
0x16a3   :  { %2600 = vtanh.f32 %v1100_v4 }
0x16af   :  { %v2599_v31 = vpop.eup %2598 }
0x16b0   :  { %v2601_v8 = vpop.eup %2600  ;;  %v1464_v10 = vmul.f32 %v2599_v31, %v1379_v36 }
0x1710   :  { %v1467_v35 = vpop.permute.xlu1 %1466 }
0x1711   :  { %v1469_v5 = vmul.f32 %v2599_v31, %v1467_v35 }
0x1713   :  { %1471 = vrot.lane.b32.xlu1 %v1469_v5, %s2729_s20 }
0x1717   :  { %1103 = vrot.lane.b32.xlu1 %v2601_v8, %s2728_s1 }
0x1785   :  { %v1472_v37 = vpop.permute.xlu1 %1471 }
0x1786   :  { %v1474_v38 = vadd.f32 %v1472_v37, %v1464_v10 }
0x1788   :  { %2602 = vtanh.f32 %v1474_v38  ;;  %v1482_v0 = vsel %vm446_vm5, %v1474_v38, %v1379_v36 }
0x1789   :  { %v1104_v23 = vpop.permute.xlu1 %1103 }
0x178a   :  { %v1106_v39 = vmul.f32 %v2593_v63, %v1104_v23 }
0x178c   :  { %v1113_v40 = vsel %vm1112_vm4, %v1106_v39, %v3048_v32 }
0x178d   :  { %1115 = vrot.lane.b32.xlu1 %v1113_v40, %s2729_s20 }
0x1795   :  { %v2603_v41 = vpop.eup %2602 }
0x1796   :  { %1477 = vrot.lane.b32.xlu0 %v2603_v41, %s2728_s1 }
0x17ff   :  { %v1116_v33 = vpop.permute.xlu1 %1115 }
0x1800   :  { %1118 = vst.msk [vmem:[#allocation2 + $0x38] sm:$0xff] %vm93_vm1, %v1116_v33 }
0x1807   :  { %v1136_v42 = vld [vmem:[#allocation2 + $0x38] sm:$0xff] }
0x1808   :  { %2421 = vmatmul.mubr.msk.f32.gmra.mxu0 %vm93_vm1, %v1136_v42  ;;  %v1478_v43 = vpop.permute.xlu0 %1477 }
0x1809   :  { %v1480_v44 = vmul.f32 %v2599_v31, %v1478_v43  ;;  %2453 = vmatprep.mubr.msk.f32.mxu0 %vm2726_vm0, %v2725_v1 }
0x180b   :  { %v1481_v32 = vsel %vm446_vm5, %v1480_v44, %v3090_v62 }
0x180c   :  { %1485 = vrot.lane.b32.xlu0 %v1481_v32, %s2729_s20 }
0x187e   :  { %v1486_v17 = vpop.permute.xlu0 %1485 }
0x187f   :  { %2454 = vmatmul.mubr.msk.f32.vlgmr.msra.gmra.mxu0 %vm93_vm1, %v1486_v17 }
0x1880   :  { %2468 = vmatpush3.msra.mxu0 %v3026_v25  ;;  %2475 = vmatprep.mubr.msk.f32.mxu0 %vm2726_vm0, %v2725_v1 }
0x1881   :  { %2469 = vmatprep.subr.mxu0 %v2725_v1 }
0x1882   :  { %2470 = vmatpush3.msra.mxu0 %v3029_v27 }
0x1883   :  { %2471 = vmatprep.subr.mxu0 %v2725_v1 }
0x1884   :  { %2472 = vmatpush3.msra.mxu0 %v3033_v28 }
0x1885   :  { %2473 = vmatprep.subr.mxu0 %v2725_v1 }
0x1886   :  { %2474 = vmatpush3.msra.mxu0 %v3037_v29 }
0x1887   :  { %2489 = vmatprep.subr.mxu0 %v2725_v1 }
0x18c8   :  { %v3149_v49 = vpop.f32.mrf.mxu0 }
0x18c9   :  { %v1271_v46 = vadd.f32 %v3149_v49, %v3081_v7 }
0x18ca   :  { %v3151_v50 = vpop.f32.mrf.mxu0 }
0x18cb   :  { %v1266_v26 = vadd.f32 %v3081_v7, %v3151_v50  ;;  %v2188_v7 = vld [vmem:[%s3256_s5] ss:$0 sm:$0xff] }
0x193f   :  { %v1555_v52 = vpop.f32.mrf.mxu0 }
0x1940   :  { %v1559_v53 = vadd.f32 %v1555_v52, %v1246_v51 }
0x1941   :  { %v2455_v54 = vpop.f32.mrf.mxu0 }
0x1942   :  { %2604 = vtanh.f32 %v1559_v53  ;;  %v2177_v57 = vmul.f32 -1.442695, %v1559_v53 }
0x1944   :  { %2606 = vpow2.f32 %v2177_v57 }
0x194f   :  { %v2605_v55 = vpop.eup %2604 }
0x1950   :  { %1569 = vrot.lane.b32.xlu1 %v2605_v55, %s2728_s1 }
0x1951   :  { %v2607_v58 = vpop.eup %2606 }
0x1952   :  { %v1563_v59 = vadd.f32 1.0, %v2607_v58 }
0x1954   :  { %2608 = vrcp.f32 %v1563_v59 }
0x1961   :  { %v2609_v60 = vpop.eup %2608 }
0x1962   :  { %v1567_v2 = vmul.f32 %v2609_v60, %v1482_v0 }
0x19c2   :  { %v1570_v62 = vpop.permute.xlu1 %1569 }
0x19c3   :  { %v1572_v63 = vmul.f32 %v2609_v60, %v1570_v62 }
0x19c5   :  { %1574 = vrot.lane.b32.xlu0 %v1572_v63, %s2729_s20 }
0x1a37   :  { %v1575_v3 = vpop.permute.xlu0 %1574 }
0x1a38   :  { %v1577_v6 = vadd.f32 %v1575_v3, %v1567_v2 }
0x1a3a   :  { %2610 = vtanh.f32 %v1577_v6  ;;  %v1585_v8 = vsel %vm557_vm7, %v1577_v6, %v1482_v0 }
0x1a47   :  { %v2611_v12 = vpop.eup %2610 }
0x1a48   :  { %1580 = vrot.lane.b32.xlu1 %v2611_v12, %s2728_s1 }
0x1aba   :  { %v1581_v13 = vpop.permute.xlu1 %1580 }
0x1abb   :  { %v1583_v15 = vmul.f32 %v2609_v60, %v1581_v13 }
0x1abd   :  { %v1584_v16 = vsel %vm557_vm7, %v1583_v15, %v1481_v32 }
0x1abe   :  { %1588 = vrot.lane.b32.xlu0 %v1584_v16, %s2729_s20 }
0x1b30   :  { %v1589_v18 = vpop.permute.xlu0 %1588 }
0x1b31   :  { %2465 = vmatmul.mubr.msk.f32.vlgmr.msra.gmra.mxu1 %vm93_vm1, %v1589_v18 }
0x1b32   :  { %2479 = vmatpush3.msra.mxu1 %v3026_v25  ;;  %2486 = vmatprep.mubr.msk.f32.mxu1 %vm2726_vm0, %v2725_v1 }
0x1b33   :  { %2480 = vmatprep.subr.mxu1 %v2725_v1 }
0x1b34   :  { %2481 = vmatpush3.msra.mxu1 %v3029_v27 }
0x1b35   :  { %2482 = vmatprep.subr.mxu1 %v2725_v1 }
0x1b36   :  { %2483 = vmatpush3.msra.mxu1 %v3033_v28 }
0x1b37   :  { %2484 = vmatprep.subr.mxu1 %v2725_v1 }
0x1b38   :  { %2485 = vmatpush3.msra.mxu1 %v3037_v29 }
0x1b39   :  { %2500 = vmatprep.subr.mxu1 %v2725_v1 }
0x1bf1   :  { %v1658_v19 = vpop.f32.mrf.mxu1 }
0x1bf2   :  { %v1662_v20 = vadd.f32 %v1658_v19, %v1251_v61 }
0x1bf3   :  { %v2466_v14 = vpop.f32.mrf.mxu1 }
0x1bf4   :  { %2612 = vtanh.f32 %v1662_v20  ;;  %v2179_v22 = vmul.f32 -1.442695, %v1662_v20 }
0x1bf6   :  { %2614 = vpow2.f32 %v2179_v22 }
0x1c01   :  { %v2613_v21 = vpop.eup %2612 }
0x1c02   :  { %1672 = vrot.lane.b32.xlu1 %v2613_v21, %s2728_s1 }
0x1c03   :  { %v2615_v24 = vpop.eup %2614 }
0x1c04   :  { %v1666_v4 = vadd.f32 1.0, %v2615_v24 }
0x1c06   :  { %2616 = vrcp.f32 %v1666_v4 }
0x1c13   :  { %v2617_v31 = vpop.eup %2616 }
0x1c14   :  { %v1670_v36 = vmul.f32 %v2617_v31, %v1585_v8 }
0x1c74   :  { %v1673_v35 = vpop.permute.xlu1 %1672 }
0x1c75   :  { %v1675_v5 = vmul.f32 %v2617_v31, %v1673_v35 }
0x1c77   :  { %1677 = vrot.lane.b32.xlu0 %v1675_v5, %s2729_s20 }
0x1ce9   :  { %v1678_v10 = vpop.permute.xlu0 %1677 }
0x1cea   :  { %v1680_v37 = vadd.f32 %v1678_v10, %v1670_v36 }
0x1cec   :  { %2618 = vtanh.f32 %v1680_v37  ;;  %v1688_v48 = vsel %vm668_vm9, %v1680_v37, %v1585_v8 }
0x1cf9   :  { %v2619_v38 = vpop.eup %2618 }
0x1cfa   :  { %1683 = vrot.lane.b32.xlu1 %v2619_v38, %s2728_s1 }
0x1d6c   :  { %v1684_v23 = vpop.permute.xlu1 %1683 }
0x1d6d   :  { %v1686_v39 = vmul.f32 %v2617_v31, %v1684_v23 }
0x1d6f   :  { %v1687_v40 = vsel %vm668_vm9, %v1686_v39, %v1584_v16 }
0x1d70   :  { %1691 = vrot.lane.b32.xlu0 %v1687_v40, %s2729_s20 }
0x1de2   :  { %v1692_v41 = vpop.permute.xlu0 %1691 }
0x1de3   :  { %2476 = vmatmul.mubr.msk.f32.vlgmr.msra.gmra.mxu0 %vm93_vm1, %v1692_v41 }
0x1de4   :  { %2490 = vmatpush3.msra.mxu0 %v3026_v25  ;;  %2497 = vmatprep.mubr.msk.f32.mxu0 %vm2726_vm0, %v2725_v1 }
0x1de5   :  { %2491 = vmatprep.subr.mxu0 %v2725_v1 }
0x1de6   :  { %2492 = vmatpush3.msra.mxu0 %v3029_v27 }
0x1de7   :  { %2493 = vmatprep.subr.mxu0 %v2725_v1 }
0x1de8   :  { %2494 = vmatpush3.msra.mxu0 %v3033_v28 }
0x1de9   :  { %2495 = vmatprep.subr.mxu0 %v2725_v1 }
0x1dea   :  { %2496 = vmatpush3.msra.mxu0 %v3037_v29 }
0x1ea3   :  { %v1761_v33 = vpop.f32.mrf.mxu0 }
0x1ea4   :  { %v1765_v42 = vadd.f32 %v1761_v33, %v1256_v34 }
0x1ea5   :  { %v2477_v43 = vpop.f32.mrf.mxu0 }
0x1ea6   :  { %2620 = vtanh.f32 %v1765_v42  ;;  %v2181_v32 = vmul.f32 -1.442695, %v1765_v42 }
0x1ea8   :  { %2622 = vpow2.f32 %v2181_v32 }
0x1eb3   :  { %v2621_v44 = vpop.eup %2620 }
0x1eb4   :  { %1775 = vrot.lane.b32.xlu1 %v2621_v44, %s2728_s1 }
0x1eb5   :  { %v2623_v17 = vpop.eup %2622 }
0x1eb6   :  { %v1769_v11 = vadd.f32 1.0, %v2623_v17 }
0x1eb8   :  { %2624 = vrcp.f32 %v1769_v11 }
0x1ec5   :  { %v2625_v45 = vpop.eup %2624 }
0x1ec6   :  { %v1773_v53 = vmul.f32 %v2625_v45, %v1688_v48 }
0x1f26   :  { %v1776_v51 = vpop.permute.xlu1 %1775 }
0x1f27   :  { %v1778_v52 = vmul.f32 %v2625_v45, %v1776_v51 }
0x1f29   :  { %1780 = vrot.lane.b32.xlu0 %v1778_v52, %s2729_s20 }
0x1f9b   :  { %v1781_v54 = vpop.permute.xlu0 %1780 }
0x1f9c   :  { %v1783_v55 = vadd.f32 %v1781_v54, %v1773_v53 }
0x1f9e   :  { %2626 = vtanh.f32 %v1783_v55 }
0x1fab   :  { %v2627_v57 = vpop.eup %2626 }
0x1fac   :  { %1786 = vrot.lane.b32.xlu1 %v2627_v57, %s2728_s1 }
0x201e   :  { %v1787_v58 = vpop.permute.xlu1 %1786 }
0x201f   :  { %v1789_v59 = vmul.f32 %v2625_v45, %v1787_v58 }
0x2021   :  { %v1790_v60 = vsel %vm779_vm11, %v1789_v59, %v1687_v40 }
0x2022   :  { %1794 = vrot.lane.b32.xlu0 %v1790_v60, %s2729_s20 }
0x2094   :  { %v1795_v62 = vpop.permute.xlu0 %1794 }
0x2095   :  { %2487 = vmatmul.mubr.msk.f32.vlgmr.msra.gmra.mxu1 %vm93_vm1, %v1795_v62 }
0x2096   :  { %2501 = vmatpush3.msra.mxu1 %v3026_v25  ;;  %2508 = vmatprep.mubr.msk.f32.mxu1 %vm2726_vm0, %v2725_v1  ;;  %vm2131_vm0 = vcmask 7168  }
0x2097   :  { %2502 = vmatprep.subr.mxu1 %v2725_v1 }
0x2098   :  { %2503 = vmatpush3.msra.mxu1 %v3029_v27 }
0x2099   :  { %2504 = vmatprep.subr.mxu1 %v2725_v1 }
0x209a   :  { %2505 = vmatpush3.msra.mxu1 %v3033_v28 }
0x209b   :  { %2506 = vmatprep.subr.mxu1 %v2725_v1 }
0x209c   :  { %2507 = vmatpush3.msra.mxu1 %v3037_v29  ;;  %v1791_v29 = vsel %vm779_vm11, %v1783_v55, %v1688_v48 }
0x2155   :  { %v1864_v63 = vpop.f32.mrf.mxu1 }
0x2156   :  { %v1868_v25 = vadd.f32 %v1864_v63, %v1261_v56  ;;  %v2189_v63 = vld [vmem:[#allocation4] ss:$0 sm:$0xff] }
0x2157   :  { %v2488_v0 = vpop.f32.mrf.mxu1 }
0x2158   :  { %2628 = vtanh.f32 %v1868_v25  ;;  %v2183_v3 = vmul.f32 -1.442695, %v1868_v25 }
0x215a   :  { %2630 = vpow2.f32 %v2183_v3 }
0x2165   :  { %v2629_v2 = vpop.eup %2628 }
0x2166   :  { %1878 = vrot.lane.b32.xlu1 %v2629_v2, %s2728_s1 }
0x2167   :  { %v2631_v27 = vpop.eup %2630 }
0x2168   :  { %v1872_v6 = vadd.f32 1.0, %v2631_v27 }
0x216a   :  { %2632 = vrcp.f32 %v1872_v6 }
0x2177   :  { %v2633_v28 = vpop.eup %2632 }
0x2178   :  { %v1876_v47 = vmul.f32 %v2633_v28, %v1791_v29 }
0x21d8   :  { %v1879_v12 = vpop.permute.xlu1 %1878 }
0x21d9   :  { %v1881_v1 = vmul.f32 %v2633_v28, %v1879_v12 }
0x21db   :  { %1883 = vrot.lane.b32.xlu0 %v1881_v1, %s2729_s20 }
0x224d   :  { %v1884_v13 = vpop.permute.xlu0 %1883 }
0x224e   :  { %v1886_v15 = vadd.f32 %v1884_v13, %v1876_v47 }
0x2250   :  { %2634 = vtanh.f32 %v1886_v15  ;;  %v1894_v50 = vsel %vm890_vm13, %v1886_v15, %v1791_v29 }
0x225d   :  { %v2635_v16 = vpop.eup %2634 }
0x225e   :  { %1889 = vrot.lane.b32.xlu1 %v2635_v16, %s2728_s1 }
0x22d0   :  { %v1890_v18 = vpop.permute.xlu1 %1889 }
0x22d1   :  { %v1892_v61 = vmul.f32 %v2633_v28, %v1890_v18 }
0x22d3   :  { %v1893_v19 = vsel %vm890_vm13, %v1892_v61, %v1790_v60 }
0x22d4   :  { %1897 = vrot.lane.b32.xlu0 %v1893_v19, %s2729_s20 }
0x2346   :  { %v1898_v20 = vpop.permute.xlu0 %1897 }
0x2347   :  { %2498 = vmatmul.mubr.msk.f32.vlgmr.msra.gmra.mxu0 %vm93_vm1, %v1898_v20 }
0x2407   :  { %v1967_v14 = vpop.f32.mrf.mxu0 }
0x2408   :  { %v1971_v21 = vadd.f32 %v1967_v14, %v1266_v26 }
0x2409   :  { %v2499_v22 = vpop.f32.mrf.mxu0 }
0x240a   :  { %2636 = vtanh.f32 %v1971_v21  ;;  %v2185_v4 = vmul.f32 -1.442695, %v1971_v21 }
0x240c   :  { %2638 = vpow2.f32 %v2185_v4 }
0x2417   :  { %v2637_v24 = vpop.eup %2636 }
0x2418   :  { %1981 = vrot.lane.b32.xlu1 %v2637_v24, %s2728_s1 }
0x2419   :  { %v2639_v31 = vpop.eup %2638 }
0x241a   :  { %v1975_v35 = vadd.f32 1.0, %v2639_v31 }
0x241c   :  { %2640 = vrcp.f32 %v1975_v35 }
0x2429   :  { %v2641_v5 = vpop.eup %2640 }
0x242a   :  { %v1979_v10 = vmul.f32 %v2641_v5, %v1894_v50 }
0x248a   :  { %v1982_v8 = vpop.permute.xlu1 %1981 }
0x248b   :  { %v1984_v36 = vmul.f32 %v2641_v5, %v1982_v8 }
0x248d   :  { %1986 = vrot.lane.b32.xlu0 %v1984_v36, %s2729_s20 }
0x24ff   :  { %v1987_v37 = vpop.permute.xlu0 %1986 }
0x2500   :  { %v1989_v38 = vadd.f32 %v1987_v37, %v1979_v10 }
0x2502   :  { %2642 = vtanh.f32 %v1989_v38  ;;  %v1997_v49 = vsel %vm1001_vm15, %v1989_v38, %v1894_v50 }
0x250f   :  { %v2643_v23 = vpop.eup %2642 }
0x2510   :  { %1992 = vrot.lane.b32.xlu1 %v2643_v23, %s2728_s1 }
0x2582   :  { %v1993_v39 = vpop.permute.xlu1 %1992 }
0x2583   :  { %v1995_v40 = vmul.f32 %v2641_v5, %v1993_v39 }
0x2585   :  { %v1996_v41 = vsel %vm1001_vm15, %v1995_v40, %v1893_v19 }
0x2586   :  { %2000 = vrot.lane.b32.xlu0 %v1996_v41, %s2729_s20 }
0x25f8   :  { %v2001_v34 = vpop.permute.xlu0 %2000 }
0x25f9   :  { %2509 = vmatmul.mubr.msk.f32.vlgmr.msra.gmra.mxu1 %vm93_vm1, %v2001_v34 }
0x26b9   :  { %v2070_v33 = vpop.f32.mrf.mxu1 }
0x26ba   :  { %v2074_v42 = vadd.f32 %v2070_v33, %v1271_v46 }
0x26bb   :  { %v2510_v43 = vpop.f32.mrf.mxu1 }
0x26bc   :  { %2644 = vtanh.f32 %v2074_v42  ;;  %v2187_v32 = vmul.f32 -1.442695, %v2074_v42 }
0x26be   :  { %2646 = vpow2.f32 %v2187_v32 }
0x26c9   :  { %v2645_v44 = vpop.eup %2644 }
0x26ca   :  { %2084 = vrot.lane.b32.xlu1 %v2645_v44, %s2728_s1 }
0x26cb   :  { %v2647_v17 = vpop.eup %2646 }
0x26cc   :  { %v2078_v11 = vadd.f32 1.0, %v2647_v17 }
0x26ce   :  { %2648 = vrcp.f32 %v2078_v11 }
0x26db   :  { %v2649_v45 = vpop.eup %2648 }
0x26dc   :  { %v2082_v48 = vmul.f32 %v2649_v45, %v1997_v49 }
0x273c   :  { %v2085_v51 = vpop.permute.xlu1 %2084 }
0x273d   :  { %v2087_v52 = vmul.f32 %v2649_v45, %v2085_v51 }
0x273f   :  { %2089 = vrot.lane.b32.xlu0 %v2087_v52, %s2729_s20 }
0x2743   :  { %2106 = vrot.lane.b32.xlu0 %v2188_v7, %s2730_s24 }
0x27b1   :  { %v2090_v53 = vpop.permute.xlu0 %2089 }
0x27b2   :  { %v2092_v54 = vadd.f32 %v2090_v53, %v2082_v48 }
0x27b4   :  { %2650 = vtanh.f32 %v2092_v54 }
0x27b5   :  { %v2107_v59 = vpop.permute.xlu0 %2106 }
0x27c1   :  { %v2651_v55 = vpop.eup %2650 }
0x27c2   :  { %2095 = vrot.lane.b32.xlu1 %v2651_v55, %s2728_s1 }
0x2834   :  { %v2096_v57 = vpop.permute.xlu1 %2095 }
0x2835   :  { %v2098_v58 = vmul.f32 %v2649_v45, %v2096_v57 }
0x2837   :  { %v2099_v60 = vsel %vm1112_vm4, %v2098_v58, %v1996_v41 }
0x2838   :  { %v2109_v62 = vmul.f32 %v2107_v59, %v2099_v60 }
0x283a   :  { %2111 = vrot.lane.b32.xlu1 %v2109_v62, %s2729_s20 }
0x28ac   :  { %v2112_v56 = vpop.permute.xlu1 %2111 }
0x28ad   :  { %v2114_v30 = vsel %vm93_vm1, %v2112_v56, 0.0 }
0x28ae   :  { %2115 = vadd.xlane.f32.xlu0 %v2114_v30 }
0x2937   :  { %v2116_v25 = vpop.xlane.xlu0 %2115 }
0x2938   :  { %v2124_v0 = vadd.f32 %v2189_v63, %v2116_v25 }
0x293a   :  { %v2190_v2 = vmul.f32 -1.442695, %v2124_v0 }
0x293c   :  { %2652 = vpow2.f32 %v2190_v2 }
0x2949   :  { %v2653_v3 = vpop.eup %2652 }
0x294a   :  { %v2128_v27 = vadd.f32 1.0, %v2653_v3 }
0x294c   :  { %2654 = vrcp.f32 %v2128_v27 }
0x2959   :  { %v2655_v6 = vpop.eup %2654 }
0x295a   :  { %2132 = vst.msk [vmem:[%s3258_s7] sm:$0xff] %vm2131_vm0, %v2655_v6 }
0x295b   :  { %2137 = vsyncpa [#allocation6], 1 }
0x295c   :  { %2138 = vsyncpa [#allocation8], 1 }

</bundles_post_ra>
